<compile_context>
chip_gen: v7x
topology: tpu7x:2x2x1
jax: 0.10.0
libtpu: 0.0.40
codegen_flags: <defaults>
</compile_context>

<pallas_src>
import numpy as np
import jax
import jax.numpy as jnp
from jax.experimental import pallas as pl
from jax.experimental.pallas import tpu as pltpu


def _silu(x):
    return x * jax.nn.sigmoid(x)


def egcl_kernel(
    # per-graph, per-edge indices (int32)
    row_e_ref,    # (1, E, 1)  source node per edge
    colN_e_ref,   # (1, E, 1)  target node per edge, pre-offset by +N
    row_t_ref,    # (1, 1, E)  source node per edge, lane-major (scatter layout)
    # per-graph, per-node inputs
    h_ref,        # (1, N, RAW)  f32
    coord_ref,    # (1, N, CP)   f32 (lane-padded coords, zeros beyond C)
    invc_ref,     # (1, N, 1)    f32 precomputed 1/max(in_degree, 1)
    # msg_mlp params (first linear split over the concat: h_i | h_j | dist)
    w1a_ref, w1b_ref, w1c_ref, b1_ref, w2_ref, b2_ref,
    # trans_mlp params (wtxT is the final Linear(hid,1) weight, transposed)
    wt1_ref, bt1_ref, wt2_ref, bt2_ref, wtxT_ref,
    # posi_mlp params (first linear split over the concat: p | msg_sum)
    wp1a_ref, wp1b_ref, bp1_ref, wp2_ref, bp2_ref,
    # outputs
    str_out_ref,   # (1, N, RAW)
    coord_out_ref, # (1, N, CP)
):
    f32 = jnp.float32

    h = h_ref[0]          # (N, RAW)
    coord = coord_ref[0]  # (N, CP)
    N = h.shape[0]
    CP = coord.shape[1]
    E = row_e_ref.shape[1]
    hid = w2_ref.shape[0]
    two_n = 2 * N

    # ---- one-hot matrices, built once in the layouts they are consumed in ---
    # gather one-hot (E, 2N): lanes [0:N] select h[row]/coord[row], lanes
    # [N:2N] select h[col]/-coord[col] (col arrives pre-offset by +N, so a
    # single iota + two compares suffices; no lane concat of one-hots).
    iota_e2n = jax.lax.broadcasted_iota(jnp.int32, (E, two_n), 1)
    gather_oh = jnp.logical_or(row_e_ref[0] == iota_e2n,
                               colN_e_ref[0] == iota_e2n).astype(f32)   # (E, 2N)

    # scatter one-hot (N, E): built directly transposed -> plain (N,E)@(E,.)
    # matmul for the segment sums, E on the lane axis, no XLU transpose.
    iota_ne = jax.lax.broadcasted_iota(jnp.int32, (N, E), 0)
    scat_oh = (row_t_ref[0] == iota_ne).astype(f32)                     # (N, E)

    # ---- per-node projections for the msg_mlp first linear ------------------
    hwa = jnp.dot(h, w1a_ref[...], preferred_element_type=f32)   # (N, hid)
    hwb = jnp.dot(h, w1b_ref[...], preferred_element_type=f32)   # (N, hid)

    # ---- ONE fused gather matmul: (E, 2N) @ (2N, hid+CP) --------------------
    # rows [0:N]  = [ hWa | +coord ]   (selected by the row one-hot half)
    # rows [N:2N] = [ hWb | -coord ]   (selected by the col one-hot half)
    # lanes [0:hid]      -> h[row]@W1a + h[col]@W1b
    # lanes [hid:hid+CP] -> coord[row] - coord[col]
    rhs = jnp.concatenate(
        [jnp.concatenate([hwa, coord], axis=1),
         jnp.concatenate([hwb, -coord], axis=1)], axis=0)        # (2N, hid+CP)
    gathered = jnp.dot(gather_oh, rhs, preferred_element_type=f32)  # (E, hid+CP)
    hw_e = gathered[:, :hid]          # (E, hid)  lane-aligned slice
    coord_diff = gathered[:, hid:]    # (E, CP)   lane-aligned slice (pads = 0)

    sqr_dist = jnp.sum(coord_diff * coord_diff, axis=1, keepdims=True)  # (E, 1)

    # ---- msg_mlp: SiLU(Lin2(SiLU(Lin1(cat(h_i, h_j, d))))) ------------------
    # dist column is a rank-1 term -> VPU broadcast multiply (no K=1 matmul).
    z = _silu(hw_e + sqr_dist * w1c_ref[...] + b1_ref[...])
    msg = _silu(jnp.dot(z, w2_ref[...], preferred_element_type=f32)
                + b2_ref[...])                                   # (E, hid)

    # ---- trans_mlp -> per-edge scalar scale ---------------------------------
    t = _silu(jnp.dot(msg, wt1_ref[...], preferred_element_type=f32)
              + bt1_ref[...])
    t = _silu(jnp.dot(t, wt2_ref[...], preferred_element_type=f32)
              + bt2_ref[...])
    # Final Linear(hid, 1, bias=False): N=1 output -> VPU mul + lane reduce.
    scale = jnp.sum(t * wtxT_ref[...], axis=1, keepdims=True)    # (E, 1)
    trans = coord_diff * scale                                   # (E, CP)

    # ---- fused segment reductions: ONE (N,E)@(E, hid+CP) MXU pass -----------
    # Lane layout [ msg (hid=32) | trans (CP=8) ]: all boundaries multiples of
    # 8, so the output slices are lane-aligned.  Count column is not needed
    # (inv_count precomputed in the wrapper).
    seg_data = jnp.concatenate([msg, trans], axis=1)             # (E, hid+CP)
    seg = jnp.dot(scat_oh, seg_data, preferred_element_type=f32) # (N, hid+CP)
    msg_sum = seg[:, :hid]                                       # (N, hid)
    trans_sum = seg[:, hid:]                                     # (N, CP)

    # ---- posi_mlp: p + Lin2(SiLU(Lin1(cat(p, msg_sum)))) --------------------
    q = _silu(jnp.dot(h, wp1a_ref[...], preferred_element_type=f32)
              + jnp.dot(msg_sum, wp1b_ref[...], preferred_element_type=f32)
              + bp1_ref[...])
    dh = jnp.dot(q, wp2_ref[...], preferred_element_type=f32) + bp2_ref[...]

    str_out_ref[0] = h + dh
    coord_out_ref[0] = coord + trans_sum * invc_ref[0]


def init_params(key, raw_dim, hid_dim):
    """Deterministic synthetic init (weights stored as (in, out))."""
    ks = jax.random.split(key, 10)

    def lin_w(k, fan_in, fan_out, scale=None):
        s = (1.0 / np.sqrt(fan_in)) if scale is None else scale
        return jax.random.uniform(k, (fan_in, fan_out), jnp.float32, -s, s)

    def lin_b(k, fan_in, fan_out):
        s = 1.0 / np.sqrt(fan_in)
        return jax.random.uniform(k, (1, fan_out), jnp.float32, -s, s)

    p = {}
    # msg_mlp: Linear(2*raw+1, hid), SiLU, Linear(hid, hid), SiLU
    p["w1"] = lin_w(ks[0], 2 * raw_dim + 1, hid_dim)
    p["b1"] = lin_b(ks[0], 2 * raw_dim + 1, hid_dim)
    p["w2"] = lin_w(ks[1], hid_dim, hid_dim)
    p["b2"] = lin_b(ks[1], hid_dim, hid_dim)
    # trans_mlp: Linear(hid, hid), SiLU, Linear(hid, hid), SiLU, Linear(hid, 1, bias=False)
    p["wt1"] = lin_w(ks[2], hid_dim, hid_dim)
    p["bt1"] = lin_b(ks[2], hid_dim, hid_dim)
    p["wt2"] = lin_w(ks[3], hid_dim, hid_dim)
    p["bt2"] = lin_b(ks[3], hid_dim, hid_dim)
    xavier_scale = 0.001 * np.sqrt(6.0 / (hid_dim + 1))   # xavier_uniform, gain=0.001
    p["wtx"] = lin_w(ks[4], hid_dim, 1, scale=xavier_scale)
    # posi_mlp: Linear(raw+hid, hid), SiLU, Linear(hid, raw)
    p["wp1"] = lin_w(ks[5], raw_dim + hid_dim, hid_dim)
    p["bp1"] = lin_b(ks[5], raw_dim + hid_dim, hid_dim)
    p["wp2"] = lin_w(ks[6], hid_dim, raw_dim)
    p["bp2"] = lin_b(ks[6], hid_dim, raw_dim)
    return p


def egcl_forward(edge_index, str_feature, coord_feature, params, raw_dim):
    """Batched EGCL forward.

    edge_index: (row, col), each (B, E) int
    str_feature: (B, N, raw) f32
    coord_feature: (B, N, C) f32
    """
    row, col = edge_index
    B, E = row.shape
    _, N, _ = str_feature.shape
    C = coord_feature.shape[-1]
    hid = params["w2"].shape[0]
    CP = ((C + 7) // 8) * 8            # lane-pad coords to a multiple of 8

    row = row.astype(jnp.int32)
    col = col.astype(jnp.int32)

    # Per-edge index layouts consumed by the kernel.
    row_e = row.reshape(B, E, 1)
    colN_e = (col + N).reshape(B, E, 1)      # pre-offset for the fused one-hot
    row_t = row.reshape(B, 1, E)

    # Lane-padded coordinates (zeros beyond C keep sqr_dist / residual exact).
    coord_p = jnp.pad(coord_feature, ((0, 0), (0, 0), (0, CP - C)))

    # Static per-graph in-degree (segment-id = row) -> inv_count precomputed.
    def _inv_count(r):
        cnt = jnp.zeros((N,), jnp.float32).at[r].add(1.0)
        return 1.0 / jnp.maximum(cnt, 1.0)
    inv_count = jax.vmap(_inv_count)(row).reshape(B, N, 1)

    # Split the "cat" weights of the first linears (all params stay f32: the
    # matmuls here are MXU fill-latency bound, bf16 operand casts buy nothing).
    w1 = params["w1"]
    w1a = w1[:raw_dim]
    w1b = w1[raw_dim:2 * raw_dim]
    w1c = w1[2 * raw_dim:]                    # (1, hid) rank-1 term (VPU)
    wp1 = params["wp1"]
    wp1a = wp1[:raw_dim]
    wp1b = wp1[raw_dim:]
    wtxT = params["wtx"].T                    # (1, hid) (VPU mul + lane reduce)

    inputs = (
        row_e, colN_e, row_t, str_feature, coord_p, inv_count,
        w1a, w1b, w1c, params["b1"], params["w2"], params["b2"],
        params["wt1"], params["bt1"], params["wt2"], params["bt2"], wtxT,
        wp1a, wp1b, params["bp1"], params["wp2"], params["bp2"],
    )

    def batch_spec(shape):   # per-graph stream: leading dim advances with b
        return pl.BlockSpec(shape, lambda b: (b,) + (0,) * (len(shape) - 1))

    def const_spec(shape):   # weights/biases: fetched once, VMEM-resident
        return pl.BlockSpec(shape, lambda b: (0,) * len(shape))

    in_specs = [
        batch_spec((1, E, 1)),        # row_e
        batch_spec((1, E, 1)),        # colN_e
        batch_spec((1, 1, E)),        # row_t
        batch_spec((1, N, raw_dim)),  # str_feature
        batch_spec((1, N, CP)),       # coord_p
        batch_spec((1, N, 1)),        # inv_count
    ] + [const_spec(w.shape) for w in inputs[6:]]

    out_specs = (batch_spec((1, N, raw_dim)), batch_spec((1, N, CP)))

    str_out, coord_out_p = pl.pallas_call(
        egcl_kernel,
        grid=(B,),
        in_specs=in_specs,
        out_specs=out_specs,
        out_shape=(jax.ShapeDtypeStruct((B, N, raw_dim), jnp.float32),
                   jax.ShapeDtypeStruct((B, N, CP), jnp.float32)),
        compiler_params=pltpu.CompilerParams(
            dimension_semantics=("parallel",)),
    )(*inputs)

    return str_out, coord_out_p[..., :C]


def egcl_reference(edge_index, h, coord, params, raw_dim):
    """Pure-JAX f32 reference mirroring the PyTorch forward (single graph)."""
    row, col = edge_index
    N = h.shape[0]
    coord_diff = coord[row] - coord[col]
    sqr_dist = jnp.sum(coord_diff ** 2, axis=1, keepdims=True)

    inp = jnp.concatenate([h[row], h[col], sqr_dist], axis=1)
    msg = _silu(_silu(inp @ params["w1"] + params["b1"]) @ params["w2"] + params["b2"])

    t = _silu(msg @ params["wt1"] + params["bt1"])
    t = _silu(t @ params["wt2"] + params["bt2"])
    scale = t @ params["wtx"]
    trans = coord_diff * scale

    sums = jnp.zeros((N, coord.shape[1]), jnp.float32).at[row].add(trans)
    cnt = jnp.zeros((N, coord.shape[1]), jnp.float32).at[row].add(jnp.ones_like(trans))
    coord_out = coord + sums / jnp.maximum(cnt, 1.0)

    msg_sum = jnp.zeros((N, msg.shape[1]), jnp.float32).at[row].add(msg)
    q = _silu(jnp.concatenate([h, msg_sum], axis=1) @ params["wp1"] + params["bp1"])
    str_out = h + (q @ params["wp2"] + params["bp2"])
    return str_out, coord_out


if __name__ == "__main__":
    B = 4          # graphs per pallas_call (leading "parallel" grid axis)
    N = 8          # nodes per graph
    raw_dim = 16   # str_feature dim
    coord_dim = 3  # coord_feature dim
    hid_dim = 32

    # fully-connected directed edges without self loops -> E = 56 (per graph)
    ii, jj = np.meshgrid(np.arange(N), np.arange(N), indexing="ij")
    mask = ii != jj
    row1 = np.asarray(ii[mask], dtype=np.int32)
    col1 = np.asarray(jj[mask], dtype=np.int32)
    row = jnp.asarray(np.broadcast_to(row1, (B, row1.shape[0])))
    col = jnp.asarray(np.broadcast_to(col1, (B, col1.shape[0])))
    edge_index = (row, col)

    key = jax.random.PRNGKey(0)
    k_h, k_c, k_p = jax.random.split(key, 3)
    str_feature = jax.random.normal(k_h, (B, N, raw_dim), jnp.float32)
    coord_feature = jax.random.normal(k_c, (B, N, coord_dim), jnp.float32)
    params = init_params(k_p, raw_dim, hid_dim)

    fwd = jax.jit(lambda ei, h, x: egcl_forward(ei, h, x, params, raw_dim))
    str_out, coord_out = fwd(edge_index, str_feature, coord_feature)
    jax.block_until_ready((str_out, coord_out))

    ref_fn = jax.vmap(
        lambda r, c, h, x: egcl_reference((r, c), h, x, params, raw_dim))
    ref_str, ref_coord = ref_fn(row, col, str_feature, coord_feature)

    # All kernel math is f32; tolerances only need to cover the MXU's default
    # f32 matmul pass decomposition vs. XLA's reference matmuls.
    np.testing.assert_allclose(np.asarray(str_out), np.asarray(ref_str),
                               rtol=2e-2, atol=2e-2)
    np.testing.assert_allclose(np.asarray(coord_out), np.asarray(ref_coord),
                               rtol=1e-3, atol=1e-3)

    print("KERNEL_OK")
</pallas_src>

<mosaic_0001>
module attributes {stable_mosaic.version = 11 : i64} {
  func.func private @main(%arg0: i32) attributes {dimension_semantics = [#tpu.dimension_semantics<core_parallel>], iteration_bounds = array<i64: 2>, tpu.core_type = #tpu.core_type<sc_scalar_subcore>, window_params = []} {
    return
  }
}

module attributes {stable_mosaic.version = 11 : i64} {
  func.func private @main(%arg0: i32) attributes {dimension_semantics = [#tpu.dimension_semantics<core_parallel>], iteration_bounds = array<i64: 2>, tpu.core_type = #tpu.core_type<sc_scalar_subcore>, window_params = []} {
    return
  }
}

module attributes {stable_mosaic.version = 11 : i64} {
  func.func @egcl_kernel(%arg0: i32, %arg1: memref<1x56x1xi32, #tpu.memory_space<vmem>>, %arg2: memref<1x56x1xi32, #tpu.memory_space<vmem>>, %arg3: memref<1x1x56xi32, #tpu.memory_space<vmem>>, %arg4: memref<1x8x16xf32, #tpu.memory_space<vmem>>, %arg5: memref<1x8x8xf32, #tpu.memory_space<vmem>>, %arg6: memref<1x8x1xf32, #tpu.memory_space<vmem>>, %arg7: memref<16x32xf32, #tpu.memory_space<vmem>>, %arg8: memref<16x32xf32, #tpu.memory_space<vmem>>, %arg9: memref<1x32xf32, #tpu.memory_space<vmem>>, %arg10: memref<1x32xf32, #tpu.memory_space<vmem>>, %arg11: memref<32x32xf32, #tpu.memory_space<vmem>>, %arg12: memref<1x32xf32, #tpu.memory_space<vmem>>, %arg13: memref<32x32xf32, #tpu.memory_space<vmem>>, %arg14: memref<1x32xf32, #tpu.memory_space<vmem>>, %arg15: memref<32x32xf32, #tpu.memory_space<vmem>>, %arg16: memref<1x32xf32, #tpu.memory_space<vmem>>, %arg17: memref<1x32xf32, #tpu.memory_space<vmem>>, %arg18: memref<16x32xf32, #tpu.memory_space<vmem>>, %arg19: memref<32x32xf32, #tpu.memory_space<vmem>>, %arg20: memref<1x32xf32, #tpu.memory_space<vmem>>, %arg21: memref<32x16xf32, #tpu.memory_space<vmem>>, %arg22: memref<1x16xf32, #tpu.memory_space<vmem>>, %arg23: memref<1x8x16xf32, #tpu.memory_space<vmem>>, %arg24: memref<1x8x8xf32, #tpu.memory_space<vmem>>) attributes {dimension_semantics = [#tpu.dimension_semantics<parallel>], iteration_bounds = array<i64: 4>, scalar_prefetch = 0 : i64, scratch_operands = 0 : i64, tpu.core_type = #tpu.core_type<tc>, window_params = [{transform_indices = @transform_0, window_bounds = array<i64: 1, 56, 1>}, {transform_indices = @transform_1, window_bounds = array<i64: 1, 56, 1>}, {transform_indices = @transform_2, window_bounds = array<i64: 1, 1, 56>}, {transform_indices = @transform_3, window_bounds = array<i64: 1, 8, 16>}, {transform_indices = @transform_4, window_bounds = array<i64: 1, 8, 8>}, {transform_indices = @transform_5, window_bounds = array<i64: 1, 8, 1>}, {pipeline_mode = #tpu.pipeline_mode<synchronous>, transform_indices = @transform_6, window_bounds = array<i64: 16, 32>}, {pipeline_mode = #tpu.pipeline_mode<synchronous>, transform_indices = @transform_7, window_bounds = array<i64: 16, 32>}, {pipeline_mode = #tpu.pipeline_mode<synchronous>, transform_indices = @transform_8, window_bounds = array<i64: 1, 32>}, {pipeline_mode = #tpu.pipeline_mode<synchronous>, transform_indices = @transform_9, window_bounds = array<i64: 1, 32>}, {pipeline_mode = #tpu.pipeline_mode<synchronous>, transform_indices = @transform_10, window_bounds = array<i64: 32, 32>}, {pipeline_mode = #tpu.pipeline_mode<synchronous>, transform_indices = @transform_11, window_bounds = array<i64: 1, 32>}, {pipeline_mode = #tpu.pipeline_mode<synchronous>, transform_indices = @transform_12, window_bounds = array<i64: 32, 32>}, {pipeline_mode = #tpu.pipeline_mode<synchronous>, transform_indices = @transform_13, window_bounds = array<i64: 1, 32>}, {pipeline_mode = #tpu.pipeline_mode<synchronous>, transform_indices = @transform_14, window_bounds = array<i64: 32, 32>}, {pipeline_mode = #tpu.pipeline_mode<synchronous>, transform_indices = @transform_15, window_bounds = array<i64: 1, 32>}, {pipeline_mode = #tpu.pipeline_mode<synchronous>, transform_indices = @transform_16, window_bounds = array<i64: 1, 32>}, {pipeline_mode = #tpu.pipeline_mode<synchronous>, transform_indices = @transform_17, window_bounds = array<i64: 16, 32>}, {pipeline_mode = #tpu.pipeline_mode<synchronous>, transform_indices = @transform_18, window_bounds = array<i64: 32, 32>}, {pipeline_mode = #tpu.pipeline_mode<synchronous>, transform_indices = @transform_19, window_bounds = array<i64: 1, 32>}, {pipeline_mode = #tpu.pipeline_mode<synchronous>, transform_indices = @transform_20, window_bounds = array<i64: 32, 16>}, {pipeline_mode = #tpu.pipeline_mode<synchronous>, transform_indices = @transform_21, window_bounds = array<i64: 1, 16>}, {transform_indices = @transform_22, window_bounds = array<i64: 1, 8, 16>}, {transform_indices = @transform_23, window_bounds = array<i64: 1, 8, 8>}]} {
    %c0 = arith.constant 0 : index
    %c0_0 = arith.constant 0 : index
    %c0_1 = arith.constant 0 : index
    %0 = vector.load %arg4[%c0, %c0_0, %c0_1] : memref<1x8x16xf32, #tpu.memory_space<vmem>>, vector<1x8x16xf32>
    %1 = vector.shape_cast %0 : vector<1x8x16xf32> to vector<8x16xf32>
    %c0_2 = arith.constant 0 : index
    %c0_3 = arith.constant 0 : index
    %c0_4 = arith.constant 0 : index
    %2 = vector.load %arg5[%c0_2, %c0_3, %c0_4] : memref<1x8x8xf32, #tpu.memory_space<vmem>>, vector<1x8x8xf32>
    %3 = vector.shape_cast %2 : vector<1x8x8xf32> to vector<8x8xf32>
    %4 = tpu.iota {dimensions = array<i32: 1>} : vector<56x16xi32>
    %c0_5 = arith.constant 0 : index
    %c0_6 = arith.constant 0 : index
    %c0_7 = arith.constant 0 : index
    %5 = vector.load %arg1[%c0_5, %c0_6, %c0_7] : memref<1x56x1xi32, #tpu.memory_space<vmem>>, vector<1x56x1xi32>
    %6 = vector.shape_cast %5 : vector<1x56x1xi32> to vector<56x1xi32>
    %7 = vector.broadcast %6 : vector<56x1xi32> to vector<56x16xi32>
    %8 = arith.cmpi eq, %7, %4 : vector<56x16xi32>
    %c0_8 = arith.constant 0 : index
    %c0_9 = arith.constant 0 : index
    %c0_10 = arith.constant 0 : index
    %9 = vector.load %arg2[%c0_8, %c0_9, %c0_10] : memref<1x56x1xi32, #tpu.memory_space<vmem>>, vector<1x56x1xi32>
    %10 = vector.shape_cast %9 : vector<1x56x1xi32> to vector<56x1xi32>
    %11 = vector.broadcast %10 : vector<56x1xi32> to vector<56x16xi32>
    %12 = arith.cmpi eq, %11, %4 : vector<56x16xi32>
    %13 = arith.ori %8, %12 : vector<56x16xi1>
    %14 = arith.extui %13 : vector<56x16xi1> to vector<56x16xi32>
    %15 = arith.sitofp %14 : vector<56x16xi32> to vector<56x16xf32>
    %16 = tpu.iota {dimensions = array<i32: 0>} : vector<8x56xi32>
    %c0_11 = arith.constant 0 : index
    %c0_12 = arith.constant 0 : index
    %c0_13 = arith.constant 0 : index
    %17 = vector.load %arg3[%c0_11, %c0_12, %c0_13] : memref<1x1x56xi32, #tpu.memory_space<vmem>>, vector<1x1x56xi32>
    %18 = vector.shape_cast %17 : vector<1x1x56xi32> to vector<1x56xi32>
    %19 = vector.broadcast %18 : vector<1x56xi32> to vector<8x56xi32>
    %20 = arith.cmpi eq, %19, %16 : vector<8x56xi32>
    %21 = arith.extui %20 : vector<8x56xi1> to vector<8x56xi32>
    %22 = arith.sitofp %21 : vector<8x56xi32> to vector<8x56xf32>
    %c0_14 = arith.constant 0 : index
    %c0_15 = arith.constant 0 : index
    %23 = vector.load %arg7[%c0_14, %c0_15] : memref<16x32xf32, #tpu.memory_space<vmem>>, vector<16x32xf32>
    %cst = arith.constant dense<0.000000e+00> : vector<8x32xf32>
    %24 = tpu.matmul %1, %23, %cst {dimension_numbers = #tpu.dot_dimension_numbers<[1], [0], [0], [1], [0, 0, 1, 1], [], []>} : vector<8x16xf32>, vector<16x32xf32>, vector<8x32xf32> -> vector<8x32xf32>
    %c0_16 = arith.constant 0 : index
    %c0_17 = arith.constant 0 : index
    %25 = vector.load %arg8[%c0_16, %c0_17] : memref<16x32xf32, #tpu.memory_space<vmem>>, vector<16x32xf32>
    %cst_18 = arith.constant dense<0.000000e+00> : vector<8x32xf32>
    %26 = tpu.matmul %1, %25, %cst_18 {dimension_numbers = #tpu.dot_dimension_numbers<[1], [0], [0], [1], [0, 0, 1, 1], [], []>} : vector<8x16xf32>, vector<16x32xf32>, vector<8x32xf32> -> vector<8x32xf32>
    %27 = tpu.concatenate %24, %3 in 1 : vector<8x32xf32>, vector<8x8xf32> -> vector<8x40xf32>
    %cst_19 = arith.constant 0.000000e+00 : f32
    %28 = vector.broadcast %cst_19 : f32 to vector<8x8xf32>
    %29 = arith.subf %28, %3 : vector<8x8xf32>
    %30 = tpu.concatenate %26, %29 in 1 : vector<8x32xf32>, vector<8x8xf32> -> vector<8x40xf32>
    %31 = tpu.concatenate %27, %30 in 0 : vector<8x40xf32>, vector<8x40xf32> -> vector<16x40xf32>
    %cst_20 = arith.constant dense<0.000000e+00> : vector<56x40xf32>
    %32 = tpu.matmul %15, %31, %cst_20 {dimension_numbers = #tpu.dot_dimension_numbers<[1], [0], [0], [1], [0, 0, 1, 1], [], []>} : vector<56x16xf32>, vector<16x40xf32>, vector<56x40xf32> -> vector<56x40xf32>
    %33 = vector.extract_strided_slice %32 {offsets = [0, 0], sizes = [56, 32], strides = [1, 1]} : vector<56x40xf32> to vector<56x32xf32>
    %34 = vector.extract_strided_slice %32 {offsets = [0, 32], sizes = [56, 8], strides = [1, 1]} : vector<56x40xf32> to vector<56x8xf32>
    %35 = arith.mulf %34, %34 : vector<56x8xf32>
    %cst_21 = arith.constant dense<0.000000e+00> : vector<56xf32>
    %36 = vector.multi_reduction <add>, %35, %cst_21 [1] : vector<56x8xf32> to vector<56xf32>
    %37 = vector.shape_cast %36 : vector<56xf32> to vector<56x1xf32>
    %c0_22 = arith.constant 0 : index
    %c0_23 = arith.constant 0 : index
    %38 = vector.load %arg9[%c0_22, %c0_23] : memref<1x32xf32, #tpu.memory_space<vmem>>, vector<1x32xf32>
    %39 = vector.broadcast %37 : vector<56x1xf32> to vector<56x32xf32>
    %40 = vector.broadcast %38 : vector<1x32xf32> to vector<56x32xf32>
    %41 = arith.mulf %39, %40 : vector<56x32xf32>
    %42 = arith.addf %33, %41 : vector<56x32xf32>
    %c0_24 = arith.constant 0 : index
    %c0_25 = arith.constant 0 : index
    %43 = vector.load %arg10[%c0_24, %c0_25] : memref<1x32xf32, #tpu.memory_space<vmem>>, vector<1x32xf32>
    %44 = vector.broadcast %43 : vector<1x32xf32> to vector<56x32xf32>
    %45 = arith.addf %42, %44 : vector<56x32xf32>
    %46 = arith.negf %45 : vector<56x32xf32>
    %47 = math.exp %46 : vector<56x32xf32>
    %cst_26 = arith.constant 1.000000e+00 : f32
    %48 = vector.broadcast %cst_26 : f32 to vector<56x32xf32>
    %49 = arith.addf %48, %47 : vector<56x32xf32>
    %50 = arith.divf %48, %49 : vector<56x32xf32>
    %51 = arith.mulf %45, %50 : vector<56x32xf32>
    %c0_27 = arith.constant 0 : index
    %c0_28 = arith.constant 0 : index
    %52 = vector.load %arg11[%c0_27, %c0_28] : memref<32x32xf32, #tpu.memory_space<vmem>>, vector<32x32xf32>
    %cst_29 = arith.constant dense<0.000000e+00> : vector<56x32xf32>
    %53 = tpu.matmul %51, %52, %cst_29 {dimension_numbers = #tpu.dot_dimension_numbers<[1], [0], [0], [1], [0, 0, 1, 1], [], []>} : vector<56x32xf32>, vector<32x32xf32>, vector<56x32xf32> -> vector<56x32xf32>
    %c0_30 = arith.constant 0 : index
    %c0_31 = arith.constant 0 : index
    %54 = vector.load %arg12[%c0_30, %c0_31] : memref<1x32xf32, #tpu.memory_space<vmem>>, vector<1x32xf32>
    %55 = vector.broadcast %54 : vector<1x32xf32> to vector<56x32xf32>
    %56 = arith.addf %53, %55 : vector<56x32xf32>
    %57 = arith.negf %56 : vector<56x32xf32>
    %58 = math.exp %57 : vector<56x32xf32>
    %cst_32 = arith.constant 1.000000e+00 : f32
    %59 = vector.broadcast %cst_32 : f32 to vector<56x32xf32>
    %60 = arith.addf %59, %58 : vector<56x32xf32>
    %61 = arith.divf %59, %60 : vector<56x32xf32>
    %62 = arith.mulf %56, %61 : vector<56x32xf32>
    %c0_33 = arith.constant 0 : index
    %c0_34 = arith.constant 0 : index
    %63 = vector.load %arg13[%c0_33, %c0_34] : memref<32x32xf32, #tpu.memory_space<vmem>>, vector<32x32xf32>
    %cst_35 = arith.constant dense<0.000000e+00> : vector<56x32xf32>
    %64 = tpu.matmul %62, %63, %cst_35 {dimension_numbers = #tpu.dot_dimension_numbers<[1], [0], [0], [1], [0, 0, 1, 1], [], []>} : vector<56x32xf32>, vector<32x32xf32>, vector<56x32xf32> -> vector<56x32xf32>
    %c0_36 = arith.constant 0 : index
    %c0_37 = arith.constant 0 : index
    %65 = vector.load %arg14[%c0_36, %c0_37] : memref<1x32xf32, #tpu.memory_space<vmem>>, vector<1x32xf32>
    %66 = vector.broadcast %65 : vector<1x32xf32> to vector<56x32xf32>
    %67 = arith.addf %64, %66 : vector<56x32xf32>
    %68 = arith.negf %67 : vector<56x32xf32>
    %69 = math.exp %68 : vector<56x32xf32>
    %cst_38 = arith.constant 1.000000e+00 : f32
    %70 = vector.broadcast %cst_38 : f32 to vector<56x32xf32>
    %71 = arith.addf %70, %69 : vector<56x32xf32>
    %72 = arith.divf %70, %71 : vector<56x32xf32>
    %73 = arith.mulf %67, %72 : vector<56x32xf32>
    %c0_39 = arith.constant 0 : index
    %c0_40 = arith.constant 0 : index
    %74 = vector.load %arg15[%c0_39, %c0_40] : memref<32x32xf32, #tpu.memory_space<vmem>>, vector<32x32xf32>
    %cst_41 = arith.constant dense<0.000000e+00> : vector<56x32xf32>
    %75 = tpu.matmul %73, %74, %cst_41 {dimension_numbers = #tpu.dot_dimension_numbers<[1], [0], [0], [1], [0, 0, 1, 1], [], []>} : vector<56x32xf32>, vector<32x32xf32>, vector<56x32xf32> -> vector<56x32xf32>
    %c0_42 = arith.constant 0 : index
    %c0_43 = arith.constant 0 : index
    %76 = vector.load %arg16[%c0_42, %c0_43] : memref<1x32xf32, #tpu.memory_space<vmem>>, vector<1x32xf32>
    %77 = vector.broadcast %76 : vector<1x32xf32> to vector<56x32xf32>
    %78 = arith.addf %75, %77 : vector<56x32xf32>
    %79 = arith.negf %78 : vector<56x32xf32>
    %80 = math.exp %79 : vector<56x32xf32>
    %cst_44 = arith.constant 1.000000e+00 : f32
    %81 = vector.broadcast %cst_44 : f32 to vector<56x32xf32>
    %82 = arith.addf %81, %80 : vector<56x32xf32>
    %83 = arith.divf %81, %82 : vector<56x32xf32>
    %84 = arith.mulf %78, %83 : vector<56x32xf32>
    %c0_45 = arith.constant 0 : index
    %c0_46 = arith.constant 0 : index
    %85 = vector.load %arg17[%c0_45, %c0_46] : memref<1x32xf32, #tpu.memory_space<vmem>>, vector<1x32xf32>
    %86 = vector.broadcast %85 : vector<1x32xf32> to vector<56x32xf32>
    %87 = arith.mulf %84, %86 : vector<56x32xf32>
    %cst_47 = arith.constant dense<0.000000e+00> : vector<56xf32>
    %88 = vector.multi_reduction <add>, %87, %cst_47 [1] : vector<56x32xf32> to vector<56xf32>
    %89 = vector.shape_cast %88 : vector<56xf32> to vector<56x1xf32>
    %90 = vector.broadcast %89 : vector<56x1xf32> to vector<56x8xf32>
    %91 = arith.mulf %34, %90 : vector<56x8xf32>
    %92 = tpu.concatenate %62, %91 in 1 : vector<56x32xf32>, vector<56x8xf32> -> vector<56x40xf32>
    %cst_48 = arith.constant dense<0.000000e+00> : vector<8x40xf32>
    %93 = tpu.matmul %22, %92, %cst_48 {dimension_numbers = #tpu.dot_dimension_numbers<[1], [0], [0], [1], [0, 0, 1, 1], [], []>} : vector<8x56xf32>, vector<56x40xf32>, vector<8x40xf32> -> vector<8x40xf32>
    %94 = vector.extract_strided_slice %93 {offsets = [0, 0], sizes = [8, 32], strides = [1, 1]} : vector<8x40xf32> to vector<8x32xf32>
    %95 = vector.extract_strided_slice %93 {offsets = [0, 32], sizes = [8, 8], strides = [1, 1]} : vector<8x40xf32> to vector<8x8xf32>
    %c0_49 = arith.constant 0 : index
    %c0_50 = arith.constant 0 : index
    %96 = vector.load %arg18[%c0_49, %c0_50] : memref<16x32xf32, #tpu.memory_space<vmem>>, vector<16x32xf32>
    %cst_51 = arith.constant dense<0.000000e+00> : vector<8x32xf32>
    %97 = tpu.matmul %1, %96, %cst_51 {dimension_numbers = #tpu.dot_dimension_numbers<[1], [0], [0], [1], [0, 0, 1, 1], [], []>} : vector<8x16xf32>, vector<16x32xf32>, vector<8x32xf32> -> vector<8x32xf32>
    %c0_52 = arith.constant 0 : index
    %c0_53 = arith.constant 0 : index
    %98 = vector.load %arg19[%c0_52, %c0_53] : memref<32x32xf32, #tpu.memory_space<vmem>>, vector<32x32xf32>
    %cst_54 = arith.constant dense<0.000000e+00> : vector<8x32xf32>
    %99 = tpu.matmul %94, %98, %cst_54 {dimension_numbers = #tpu.dot_dimension_numbers<[1], [0], [0], [1], [0, 0, 1, 1], [], []>} : vector<8x32xf32>, vector<32x32xf32>, vector<8x32xf32> -> vector<8x32xf32>
    %100 = arith.addf %97, %99 : vector<8x32xf32>
    %c0_55 = arith.constant 0 : index
    %c0_56 = arith.constant 0 : index
    %101 = vector.load %arg20[%c0_55, %c0_56] : memref<1x32xf32, #tpu.memory_space<vmem>>, vector<1x32xf32>
    %102 = vector.broadcast %101 : vector<1x32xf32> to vector<8x32xf32>
    %103 = arith.addf %100, %102 : vector<8x32xf32>
    %104 = arith.negf %103 : vector<8x32xf32>
    %105 = math.exp %104 : vector<8x32xf32>
    %cst_57 = arith.constant 1.000000e+00 : f32
    %106 = vector.broadcast %cst_57 : f32 to vector<8x32xf32>
    %107 = arith.addf %106, %105 : vector<8x32xf32>
    %108 = arith.divf %106, %107 : vector<8x32xf32>
    %109 = arith.mulf %103, %108 : vector<8x32xf32>
    %c0_58 = arith.constant 0 : index
    %c0_59 = arith.constant 0 : index
    %110 = vector.load %arg21[%c0_58, %c0_59] : memref<32x16xf32, #tpu.memory_space<vmem>>, vector<32x16xf32>
    %cst_60 = arith.constant dense<0.000000e+00> : vector<8x16xf32>
    %111 = tpu.matmul %109, %110, %cst_60 {dimension_numbers = #tpu.dot_dimension_numbers<[1], [0], [0], [1], [0, 0, 1, 1], [], []>} : vector<8x32xf32>, vector<32x16xf32>, vector<8x16xf32> -> vector<8x16xf32>
    %c0_61 = arith.constant 0 : index
    %c0_62 = arith.constant 0 : index
    %112 = vector.load %arg22[%c0_61, %c0_62] : memref<1x16xf32, #tpu.memory_space<vmem>>, vector<1x16xf32>
    %113 = vector.broadcast %112 : vector<1x16xf32> to vector<8x16xf32>
    %114 = arith.addf %111, %113 : vector<8x16xf32>
    %115 = arith.addf %1, %114 : vector<8x16xf32>
    %c0_63 = arith.constant 0 : index
    %c0_64 = arith.constant 0 : index
    %c0_65 = arith.constant 0 : index
    %116 = vector.load %arg23[%c0_63, %c0_64, %c0_65] : memref<1x8x16xf32, #tpu.memory_space<vmem>>, vector<1x8x16xf32>
    %117 = vector.shape_cast %116 : vector<1x8x16xf32> to vector<8x16xf32>
    %118 = vector.shape_cast %115 : vector<8x16xf32> to vector<1x8x16xf32>
    tpu.vector_store %arg23[%c0_63, %c0_64, %c0_65], %118 {strides = array<i32>} : memref<1x8x16xf32, #tpu.memory_space<vmem>>, vector<1x8x16xf32>,
    %c0_66 = arith.constant 0 : index
    %c0_67 = arith.constant 0 : index
    %c0_68 = arith.constant 0 : index
    %119 = vector.load %arg6[%c0_66, %c0_67, %c0_68] : memref<1x8x1xf32, #tpu.memory_space<vmem>>, vector<1x8x1xf32>
    %120 = vector.shape_cast %119 : vector<1x8x1xf32> to vector<8x1xf32>
    %121 = vector.broadcast %120 : vector<8x1xf32> to vector<8x8xf32>
    %122 = arith.mulf %95, %121 : vector<8x8xf32>
    %123 = arith.addf %3, %122 : vector<8x8xf32>
    %c0_69 = arith.constant 0 : index
    %c0_70 = arith.constant 0 : index
    %c0_71 = arith.constant 0 : index
    %124 = vector.load %arg24[%c0_69, %c0_70, %c0_71] : memref<1x8x8xf32, #tpu.memory_space<vmem>>, vector<1x8x8xf32>
    %125 = vector.shape_cast %124 : vector<1x8x8xf32> to vector<8x8xf32>
    %126 = vector.shape_cast %123 : vector<8x8xf32> to vector<1x8x8xf32>
    tpu.vector_store %arg24[%c0_69, %c0_70, %c0_71], %126 {strides = array<i32>} : memref<1x8x8xf32, #tpu.memory_space<vmem>>, vector<1x8x8xf32>,
    return
  }
  func.func @transform_0(%arg0: i32) -> (i32, i32, i32) {
    %c0_i32 = arith.constant 0 : i32
    %c0_i32_0 = arith.constant 0 : i32
    %c0_i32_1 = arith.constant 0 : i32
    return %arg0, %c0_i32, %c0_i32_0 : i32, i32, i32
  }
  func.func @transform_1(%arg0: i32) -> (i32, i32, i32) {
    %c0_i32 = arith.constant 0 : i32
    %c0_i32_0 = arith.constant 0 : i32
    %c0_i32_1 = arith.constant 0 : i32
    return %arg0, %c0_i32, %c0_i32_0 : i32, i32, i32
  }
  func.func @transform_2(%arg0: i32) -> (i32, i32, i32) {
    %c0_i32 = arith.constant 0 : i32
    %c0_i32_0 = arith.constant 0 : i32
    %c0_i32_1 = arith.constant 0 : i32
    return %arg0, %c0_i32, %c0_i32_0 : i32, i32, i32
  }
  func.func @transform_3(%arg0: i32) -> (i32, i32, i32) {
    %c0_i32 = arith.constant 0 : i32
    %c0_i32_0 = arith.constant 0 : i32
    %c0_i32_1 = arith.constant 0 : i32
    return %arg0, %c0_i32, %c0_i32_0 : i32, i32, i32
  }
  func.func @transform_4(%arg0: i32) -> (i32, i32, i32) {
    %c0_i32 = arith.constant 0 : i32
    %c0_i32_0 = arith.constant 0 : i32
    %c0_i32_1 = arith.constant 0 : i32
    return %arg0, %c0_i32, %c0_i32_0 : i32, i32, i32
  }
  func.func @transform_5(%arg0: i32) -> (i32, i32, i32) {
    %c0_i32 = arith.constant 0 : i32
    %c0_i32_0 = arith.constant 0 : i32
    %c0_i32_1 = arith.constant 0 : i32
    return %arg0, %c0_i32, %c0_i32_0 : i32, i32, i32
  }
  func.func @transform_6(%arg0: i32) -> (i32, i32) {
    %c0_i32 = arith.constant 0 : i32
    %c0_i32_0 = arith.constant 0 : i32
    %c0_i32_1 = arith.constant 0 : i32
    return %c0_i32, %c0_i32_0 : i32, i32
  }
  func.func @transform_7(%arg0: i32) -> (i32, i32) {
    %c0_i32 = arith.constant 0 : i32
    %c0_i32_0 = arith.constant 0 : i32
    %c0_i32_1 = arith.constant 0 : i32
    return %c0_i32, %c0_i32_0 : i32, i32
  }
  func.func @transform_8(%arg0: i32) -> (i32, i32) {
    %c0_i32 = arith.constant 0 : i32
    %c0_i32_0 = arith.constant 0 : i32
    %c0_i32_1 = arith.constant 0 : i32
    return %c0_i32, %c0_i32_0 : i32, i32
  }
  func.func @transform_9(%arg0: i32) -> (i32, i32) {
    %c0_i32 = arith.constant 0 : i32
    %c0_i32_0 = arith.constant 0 : i32
    %c0_i32_1 = arith.constant 0 : i32
    return %c0_i32, %c0_i32_0 : i32, i32
  }
  func.func @transform_10(%arg0: i32) -> (i32, i32) {
    %c0_i32 = arith.constant 0 : i32
    %c0_i32_0 = arith.constant 0 : i32
    %c0_i32_1 = arith.constant 0 : i32
    return %c0_i32, %c0_i32_0 : i32, i32
  }
  func.func @transform_11(%arg0: i32) -> (i32, i32) {
    %c0_i32 = arith.constant 0 : i32
    %c0_i32_0 = arith.constant 0 : i32
    %c0_i32_1 = arith.constant 0 : i32
    return %c0_i32, %c0_i32_0 : i32, i32
  }
  func.func @transform_12(%arg0: i32) -> (i32, i32) {
    %c0_i32 = arith.constant 0 : i32
    %c0_i32_0 = arith.constant 0 : i32
    %c0_i32_1 = arith.constant 0 : i32
    return %c0_i32, %c0_i32_0 : i32, i32
  }
  func.func @transform_13(%arg0: i32) -> (i32, i32) {
    %c0_i32 = arith.constant 0 : i32
    %c0_i32_0 = arith.constant 0 : i32
    %c0_i32_1 = arith.constant 0 : i32
    return %c0_i32, %c0_i32_0 : i32, i32
  }
  func.func @transform_14(%arg0: i32) -> (i32, i32) {
    %c0_i32 = arith.constant 0 : i32
    %c0_i32_0 = arith.constant 0 : i32
    %c0_i32_1 = arith.constant 0 : i32
    return %c0_i32, %c0_i32_0 : i32, i32
  }
  func.func @transform_15(%arg0: i32) -> (i32, i32) {
    %c0_i32 = arith.constant 0 : i32
    %c0_i32_0 = arith.constant 0 : i32
    %c0_i32_1 = arith.constant 0 : i32
    return %c0_i32, %c0_i32_0 : i32, i32
  }
  func.func @transform_16(%arg0: i32) -> (i32, i32) {
    %c0_i32 = arith.constant 0 : i32
    %c0_i32_0 = arith.constant 0 : i32
    %c0_i32_1 = arith.constant 0 : i32
    return %c0_i32, %c0_i32_0 : i32, i32
  }
  func.func @transform_17(%arg0: i32) -> (i32, i32) {
    %c0_i32 = arith.constant 0 : i32
    %c0_i32_0 = arith.constant 0 : i32
    %c0_i32_1 = arith.constant 0 : i32
    return %c0_i32, %c0_i32_0 : i32, i32
  }
  func.func @transform_18(%arg0: i32) -> (i32, i32) {
    %c0_i32 = arith.constant 0 : i32
    %c0_i32_0 = arith.constant 0 : i32
    %c0_i32_1 = arith.constant 0 : i32
    return %c0_i32, %c0_i32_0 : i32, i32
  }
  func.func @transform_19(%arg0: i32) -> (i32, i32) {
    %c0_i32 = arith.constant 0 : i32
    %c0_i32_0 = arith.constant 0 : i32
    %c0_i32_1 = arith.constant 0 : i32
    return %c0_i32, %c0_i32_0 : i32, i32
  }
  func.func @transform_20(%arg0: i32) -> (i32, i32) {
    %c0_i32 = arith.constant 0 : i32
    %c0_i32_0 = arith.constant 0 : i32
    %c0_i32_1 = arith.constant 0 : i32
    return %c0_i32, %c0_i32_0 : i32, i32
  }
  func.func @transform_21(%arg0: i32) -> (i32, i32) {
    %c0_i32 = arith.constant 0 : i32
    %c0_i32_0 = arith.constant 0 : i32
    %c0_i32_1 = arith.constant 0 : i32
    return %c0_i32, %c0_i32_0 : i32, i32
  }
  func.func @transform_22(%arg0: i32) -> (i32, i32, i32) {
    %c0_i32 = arith.constant 0 : i32
    %c0_i32_0 = arith.constant 0 : i32
    %c0_i32_1 = arith.constant 0 : i32
    return %arg0, %c0_i32, %c0_i32_0 : i32, i32, i32
  }
  func.func @transform_23(%arg0: i32) -> (i32, i32, i32) {
    %c0_i32 = arith.constant 0 : i32
    %c0_i32_0 = arith.constant 0 : i32
    %c0_i32_1 = arith.constant 0 : i32
    return %arg0, %c0_i32, %c0_i32_0 : i32, i32, i32
  }
}

</mosaic_0001>

<bundles_post_ra>
// kernel: _lambda_.1
= control target key start
LH: loop header
LB: loop body
LE: loop exit
PB: predicated region body
PF: predicated region fallthrough
CT: control target
= control target key end

     0   :  { %s3660_s0 = inlined_call_operand.vmem [shape: s32[4,56,1], index: 0, kind: input, shape index: {}]   ;;  %s3661_s1 = inlined_call_operand.vmem [shape: s32[4,56,1], index: 1, kind: input, shape index: {}]   ;;  %s3662_s2 = inlined_call_operand.vmem [shape: s32[4,1,56], index: 2, kind: input, shape index: {}]   ;;  %s3663_s3 = inlined_call_operand.vmem [shape: f32[4,8,16], index: 3, kind: input, shape index: {}]   ;;  %s3664_s4 = inlined_call_operand.vmem [shape: f32[4,8,8], index: 4, kind: input, shape index: {}]   ;;  %s3665_s5 = inlined_call_operand.vmem [shape: f32[4,8,1], index: 5, kind: input, shape index: {}]   ;;  %s3666_s6 = inlined_call_operand.vmem [shape: f32[16,32], index: 6, kind: input, shape index: {}]   ;;  %s3667_s7 = inlined_call_operand.vmem [shape: f32[16,32], index: 7, kind: input, shape index: {}]   ;;  %s3668_s8 = inlined_call_operand.vmem [shape: f32[1,32], index: 8, kind: input, shape index: {}]   ;;  %s3669_s9 = inlined_call_operand.vmem [shape: f32[1,32], index: 9, kind: input, shape index: {}]   ;;  %s3670_s10 = inlined_call_operand.vmem [shape: f32[32,32], index: 10, kind: input, shape index: {}]   ;;  %s3671_s11 = inlined_call_operand.vmem [shape: f32[1,32], index: 11, kind: input, shape index: {}]   ;;  %s3672_s12 = inlined_call_operand.vmem [shape: f32[32,32], index: 12, kind: input, shape index: {}]   ;;  %s3673_s13 = inlined_call_operand.vmem [shape: f32[1,32], index: 13, kind: input, shape index: {}]   ;;  %s3674_s14 = inlined_call_operand.vmem [shape: f32[32,32], index: 14, kind: input, shape index: {}]   ;;  %s3675_s15 = inlined_call_operand.vmem [shape: f32[1,32], index: 15, kind: input, shape index: {}]   ;;  %s3676_s16 = inlined_call_operand.vmem [shape: f32[1,32], index: 16, kind: input, shape index: {}]   ;;  %s3677_s17 = inlined_call_operand.vmem [shape: f32[16,32], index: 17, kind: input, shape index: {}]   ;;  %s3678_s18 = inlined_call_operand.vmem [shape: f32[32,32], index: 18, kind: input, shape index: {}]   ;;  %s3679_s19 = inlined_call_operand.vmem [shape: f32[1,32], index: 19, kind: input, shape index: {}]   ;;  %s3680_s20 = inlined_call_operand.vmem [shape: f32[32,16], index: 20, kind: input, shape index: {}]   ;;  %s3681_s21 = inlined_call_operand.vmem [shape: f32[1,16], index: 21, kind: input, shape index: {}]   ;;  %s3682_s22 = inlined_call_operand.hbm [shape: f32[4,8,16], index: 22, kind: output, shape index: {0}]   ;;  %s3683_s23 = inlined_call_operand.vmem [shape: f32[4,8,8], index: 23, kind: output, shape index: {1}]  }
   0x1   :  { %3698 = sst [smem:[#allocation12_spill]] %s3660_s0 }
   0x2   :  { %3699 = sst [smem:[#allocation13_spill]] %s3661_s1 }
   0x3   :  { %3700 = sst [smem:[#allocation14_spill]] %s3662_s2 }
   0x4   :  { %3701 = sst [smem:[#allocation15_spill]] %s3663_s3 }
   0x5   :  { %3702 = sst [smem:[#allocation16_spill]] %s3664_s4 }
   0x6   :  { %3703 = sst [smem:[#allocation17_spill]] %s3665_s5 }
   0x7   :  { %3704 = sst [smem:[#allocation18_spill]] %s3666_s6 }
   0x8   :  { %3705 = sst [smem:[#allocation19_spill]] %s3667_s7 }
   0x9   :  { %3706 = sst [smem:[#allocation20_spill]] %s3668_s8 }
   0xa   :  { %3707 = sst [smem:[#allocation21_spill]] %s3681_s21 }
   0xb   :  { %3708 = sst [smem:[#allocation22_spill]] %s3682_s22 }
   0xc   :  { %29 = vsyncpa [#allocation3], 0 }
   0xd   :  { %31 = vsyncpa [#allocation3 + $0x1], 0  ;;  %s3171_s4 = smov 0   ;;  %s3173_s30 = smov 0  }
   0xe   :  { %s3175_s24 = smov 0   ;;  %s3177_s25 = smov 0  }
   0xf LB: > { %3709 = sst [smem:[#allocation5_spill]] %s3030_s4  ;;  %s3192_s5 = sadd.s32 4294967295, %s3042_s25   ;;  %s3042_s25 = sphi %s3177_s25, %s3734_s25   ;;  %s3038_s24 = sphi %s3175_s24, %s3736_s24   ;;  %s3034_s30 = sphi %s3173_s30, %s3738_s30   ;;  %s3030_s4 = sphi %s3171_s4, %s3737_s4  }
  0x10   : > { %3710 = sst [smem:[#allocation6_spill]] %s3038_s24  ;;  %s2422_s1 = sadd.s32 4294967294, %s3042_s25  }
  0x11   : > { %3711 = sst [smem:[#allocation7_spill]] %s3042_s25  ;;  %s3196_s26 = sadd.s32 1, %s3042_s25  }
  0x12   : > { %3712 = sst [smem:[#allocation8_spill]] %s3196_s26  ;;  %s536_s2 = sadd.s32 1, %s3038_s24 }
  0x13   : > { %s533_s6 = ssub.s32 %s3042_s25, %s3196_s26  ;;  %p546_p0 = scmp.ne.s32.totalorder %s3038_s24, %s3034_s30 }
  0x14   : > { %p534_p1 = scmp.eq.s32.totalorder %s533_s6, 0  ;;  %p547_p2 = scmp.eq.s32.totalorder %s3192_s5, 3 }
  0x15   : > { %p552_p3 = scmp.ne.s32.totalorder %s3034_s30, %s3030_s4  ;;  %p553_p4 = scmp.eq.s32.totalorder %s2422_s1, 3 }
  0x16   : > { %s3207_s27 = scalar_select %p534_p1, %s3038_s24, %s536_s2  }
  0x17   : > { %p3209_p5 = por %p547_p2, %p546_p0  ;;  %p3213_p6 = por %p553_p4, %p552_p3 }
  0x18   : > { %3713 = sst [smem:[#allocation9_spill]] %s3207_s27  ;;  %p2425_p7 = scmp.ge.s32.totalorder %s3042_s25, 1 }
  0x19   : > { %s3714_s7 = scalar_select %p3209_p5, 1, 0 }
  0x1a   : > { %s3716_s28 = scalar_select %p3213_p6, 1, 0 }
  0x1b   : > { %3715 = sst [smem:[#allocation10_spill]] %s3714_s7  ;;  %p688_p8 = scmp.lt.s32.totalorder %s3042_s25, 5 }
  0x1c   : > { %3717 = sst [smem:[#allocation11_spill]] %s3716_s28 }
  0x1d   : > { %p689_p9 = pnand %p2425_p7, %p688_p8 }
  0x1e   : > { %s3718_s0 = sld [smem:[#allocation18_spill]] (!%p689_p9)  ;;  %p776_p10 = scmp.lt.s32.totalorder (!%p689_p9), %s3192_s5, 3  ;;  %v3044_v2 = vmov (!%p689_p9), 0.0|0.0   ;;  %vm3045_vm0 = vmmov (!%p689_p9), 0   ;;  %v3046_v4 = vmov (!%p689_p9), 0.0   ;;  %v3047_v7 = vmov (!%p689_p9), 0  }
  0x1f   : > { %692 = sbr.rel (%p689_p9) target bundleno = 2358 (0x936), region = 108  ;;  %2758 = vmatprep.subr.bf16.mxu1 (!%p689_p9), %v3044_v2  ;;  %2590 = vmatprep.mubr.msk.f32.mxu1 (!%p689_p9), %vm3045_vm0, %v3046_v4  ;;  %s3719_s29 = sld [smem:[#allocation19_spill]] (!%p689_p9)  ;;  %vm912_vm1 = vcmask (!%p689_p9), 130048   ;;  %v807_v32 = vlaneseq (!%p689_p9)  ;;  %vm1062_vm2 = vcmask (!%p689_p9), 261120  }
  0x20   : > { %2855 = vset.pattern.permute.xlu0 (!%p689_p9), %v3047_v7  ;;  %2856 = vset.pattern.permute.xlu1 (!%p689_p9), %v3047_v7  ;;  %s3720_s3 = sld [smem:[#allocation15_spill]] (!%p689_p9)  ;;  %s3721_s28 = sld [smem:[#allocation16_spill]] (!%p689_p9) }
  0x21   : > { %2764 = vmatprep.subr.bf16.mxu0 (!%p689_p9), %v3044_v2  ;;  %2604 = vmatprep.mubr.msk.f32.mxu0 (!%p689_p9), %vm3045_vm0, %v3046_v4  ;;  %s3722_s21 = sld [smem:[#allocation12_spill]] (!%p689_p9)  ;;  %v808_v33 = vand.u32 (!%p689_p9), 127, %v807_v32  ;;  %s3697_s22 = smov (!%p689_p9), 96  }
  0x22   : > { %s3724_s8 = sld [smem:[#allocation20_spill]] (!%p689_p9)  ;;  %s3726_s26 = sld [smem:[#allocation14_spill]] (!%p689_p9) }
  0x24   : > { %v910_v0 = vld [vmem:[%s3718_s0] sm:$0xff] (!%p689_p9)  ;;  %v911_v1 = vld [vmem:[%s3718_s0 + $0x8] sm:$0xff] (!%p689_p9) }
  0x25   : > { %v2759_v3 = vpack.c.bf16 (!%p689_p9), %v911_v1, %v910_v0  ;;  %v986_v5 = vld [vmem:[%s3719_s29] sm:$0xff] (!%p689_p9)  ;;  %v987_v6 = vld [vmem:[%s3719_s29 + $0x8] sm:$0xff] (!%p689_p9)  ;;  %s3723_s29 = sld [smem:[#allocation13_spill]] (!%p689_p9) }
  0x26   : > { %s3236_s1 = scalar_select %p776_p10, %s3192_s5, 3  ;;  %v2762_v8 = vpack.c.bf16 %v987_v6, %v986_v5 }
  0x27   : > { %2760 = vmatpush3.bf16.msra.mxu1 %v2759_v3 }
  0x28   : > { %s3240_s2 = sshll.u32 %s3236_s1, 3  ;;  %2761 = vmatprep.subr.bf16.mxu1 %v3044_v2  ;;  %s2809_s24 = smul.u32 56, %s3236_s1 }
  0x29   : > { %s3250_s0 = scalar_lea.vmem %s3720_s3, %s3240_s2  ;;  %s3256_s4 = scalar_lea.vmem %s3721_s28, %s3240_s2 }
  0x2a   : > { %v805_v9 = vld [vmem:[%s3250_s0] sm:$0xff]  ;;  %s3262_s7 = scalar_lea.vmem %s3722_s21, %s2809_s24  ;;  %s3048_s21 = smov 32  }
  0x2b   : > { %v806_v10 = vld [vmem:[%s3256_s4] sm:$0xff]  ;;  %2591 = vmatmul.mubr.msk.f32.vlgmr.msra.gmra.mrb[0].mxu1 %vm912_vm1, %v805_v9  ;;  %v810_v12 = vld [vmem:[%s3262_s7 + $0x8] sm:$0xff]  ;;  %s3271_s28 = scalar_lea.vmem %s3723_s29, %s2809_s24  ;;  %v811_v17 = vld [vmem:[%s3262_s7 + $0x10] sm:$0xff]  ;;  %s788_s29 = scalar_lea.vmem %s3726_s26, %s3236_s1 }
  0x2c   : > { %v809_v11 = vld [vmem:[%s3262_s7] sm:$0xff]  ;;  %2763 = vmatpush3.bf16.msra.mxu1 %v2762_v8  ;;  %2597 = vmatprep.mubr.msk.f32.mxu1 %vm3045_vm0, %v3046_v4  ;;  %v1064_v13 = vsub.f32 0.0, %v806_v10  ;;  %v845_v15 = vld [vmem:[%s3271_s28 + $0x8] sm:$0xff]  ;;  %v846_v18 = vld [vmem:[%s3271_s28 + $0x10] sm:$0xff]  ;;  %s804_s1 = scalar_lea.vmem %s3683_s23, %s3240_s2  ;;  %s2514_s3 = sshll.u32 %s3192_s5, 7 }
  0x2d   : > { %817 = vperm.xlu0 %2855, %v809_v11   ;;  %820 = vperm.xlu1 %2856, %v810_v12   ;;  %v844_v14 = vld [vmem:[%s3271_s28] sm:$0xff]  ;;  %v812_v19 = vld [vmem:[%s3262_s7 + $0x18] sm:$0xff]  ;;  %v814_v23 = vld [vmem:[%s3262_s7 + $0x28] sm:$0xff]  ;;  %s3050_s5 = smov [#allocation2]  }
  0x2e   : > { %2767 = vmatprep.subr.bf16.mxu1 %v3044_v2  ;;  %v2857_v16 = vpack.i.bf16 %v1064_v13, %v806_v10  ;;  %v847_v20 = vld [vmem:[%s3271_s28 + $0x18] sm:$0xff]  ;;  %v813_v21 = vld [vmem:[%s3262_s7 + $0x20] sm:$0xff]  ;;  %v849_v24 = vld [vmem:[%s3271_s28 + $0x28] sm:$0xff]  ;;  %s2984_s25 = sshll.u32 %s3050_s5, 4  ;;  %s2985_s25 = int_to_ptr.vmem [resolvable:$false] %s2984_s25 }
  0x2f   : > { %2598 = vmatmul.mubr.msk.f32.vlgmr.msra.gmra.mrb[2].mxu1 %vm912_vm1, %v805_v9  ;;  %v848_v22 = vld [vmem:[%s3271_s28 + $0x20] sm:$0xff]  ;;  %v815_v25 = vld [vmem:[%s3262_s7 + $0x30] sm:$0xff]  ;;  %s3727_s7 = smov 96  }
  0x30   : > { %2633 = vmatprep.mubr.msk.f32.mxu1 %vm3045_vm0, %v3046_v4  ;;  %v850_v26 = vld [vmem:[%s3271_s28 + $0x30] sm:$0xff]  ;;  %s3725_s28 = sld [smem:[#allocation17_spill]] }
  0x31   : > { %852 = vperm.xlu0 %2855, %v844_v14   ;;  %855 = vperm.xlu1 %2856, %v845_v15  }
  0x35   : > { %2858 = vrot.lane.b32.xlu0 %v2857_v16, %s3048_s21  ;;  %823 = vperm.xlu1 %2856, %v811_v17  }
  0x36   : > { %s800_s21 = scalar_lea.vmem %s3725_s28, %s3240_s2 }
  0x39   : > { %858 = vperm.xlu0 %2855, %v846_v18   ;;  %826 = vperm.xlu1 %2856, %v812_v19  }
  0x3d   : > { %861 = vperm.xlu0 %2855, %v847_v20   ;;  %829 = vperm.xlu1 %2856, %v813_v21  }
  0x41   : > { %864 = vperm.xlu0 %2855, %v848_v22   ;;  %832 = vperm.xlu1 %2856, %v814_v23  }
  0x45   : > { %867 = vperm.xlu0 %2855, %v849_v24   ;;  %835 = vperm.xlu1 %2856, %v815_v25  }
  0x49   : > { %870 = vperm.xlu0 %2855, %v850_v26  }
  0xac   : > { %v818_v27 = vpop.permute.xlu0 %817  ;;  %v821_v28 = vpop.permute.xlu1 %820 }
  0xad   : > { %vm837_vm3 = vcmp.eq.s32.totalorder %v818_v27, %v808_v33  ;;  %vm838_vm6 = vcmp.eq.s32.totalorder %v821_v28, %v808_v33 }
  0xb0   : > { %v853_v29 = vpop.permute.xlu0 %852  ;;  %v856_v30 = vpop.permute.xlu1 %855 }
  0xb1   : > { %vm872_vm4 = vcmp.eq.s32.totalorder %v853_v29, %v808_v33  ;;  %vm873_vm7 = vcmp.eq.s32.totalorder %v856_v30, %v808_v33 }
  0xb2   : > { %vm879_vm5 = vmor %vm837_vm3, %vm872_vm4 }
  0xb3   : > { %v2433_v47 = vsel %vm879_vm5, 1.0, %v3046_v4  ;;  %vm880_vm8 = vmor %vm838_vm6, %vm873_vm7 }
  0xb4   : > { %v2859_v31 = vpop.permute.xlu0 %2858  ;;  %v824_v34 = vpop.permute.xlu1 %823  ;;  %v2434_v50 = vsel %vm880_vm8, 1.0, %v3046_v4 }
  0xb5   : > { %v2860_v36 = vunpack.i.l.bf16 %v2859_v31  ;;  %v2861_v39 = vunpack.i.h.bf16 %v2859_v31  ;;  %vm839_vm9 = vcmp.eq.s32.totalorder %v824_v34, %v808_v33  ;;  %v1332_v34 = vld [vmem:[%s3670_s10] sm:$0xff] }
  0xb8   : > { %v859_v37 = vpop.permute.xlu0 %858  ;;  %v827_v45 = vpop.permute.xlu1 %826 }
  0xb9   : > { %vm874_vm10 = vcmp.eq.s32.totalorder %v859_v37, %v808_v33  ;;  %vm840_vm12 = vcmp.eq.s32.totalorder %v827_v45, %v808_v33  ;;  %v1334_v37 = vld [vmem:[%s3670_s10 + $0x10] sm:$0xff] }
  0xba   : > { %vm881_vm11 = vmor %vm839_vm9, %vm874_vm10 }
  0xbb   : > { %v2435_v51 = vsel %vm881_vm11, 1.0, %v3046_v4  ;;  %vm1226_vm11 = vcmask 64512  }
  0xbc   : > { %v862_v46 = vpop.permute.xlu0 %861  ;;  %v830_v48 = vpop.permute.xlu1 %829 }
  0xbd   : > { %vm875_vm13 = vcmp.eq.s32.totalorder %v862_v46, %v808_v33  ;;  %vm841_vm15 = vcmp.eq.s32.totalorder %v830_v48, %v808_v33 }
  0xbe   : > { %vm882_vm14 = vmor %vm840_vm12, %vm875_vm13  ;;  %vm1924_vm13 = vcmask 457728  }
  0xbf   : > { %v2436_v54 = vsel %vm882_vm14, 1.0, %v3046_v4 }
  0xc0   : > { %v865_v49 = vpop.permute.xlu0 %864  ;;  %v833_v52 = vpop.permute.xlu1 %832 }
  0xc1   : > { %vm876_vm3 = vcmp.eq.s32.totalorder %v865_v49, %v808_v33  ;;  %vm842_vm5 = vcmp.eq.s32.totalorder %v833_v52, %v808_v33 }
  0xc2   : > { %vm883_vm4 = vmor %vm841_vm15, %vm876_vm3 }
  0xc3   : > { %v2437_v57 = vsel %vm883_vm4, 1.0, %v3046_v4 }
  0xc4   : > { %v868_v53 = vpop.permute.xlu0 %867  ;;  %v836_v55 = vpop.permute.xlu1 %835 }
  0xc5   : > { %vm877_vm6 = vcmp.eq.s32.totalorder %v868_v53, %v808_v33  ;;  %vm843_vm8 = vcmp.eq.s32.totalorder %v836_v55, %v808_v33 }
  0xc6   : > { %vm884_vm7 = vmor %vm842_vm5, %vm877_vm6 }
  0xc7   : > { %v2438_v58 = vsel %vm884_vm7, 1.0, %v3046_v4 }
  0xc8   : > { %v871_v56 = vpop.permute.xlu0 %870 }
  0xc9   : > { %vm878_vm9 = vcmp.eq.s32.totalorder %v871_v56, %v808_v33 }
  0xca   : > { %vm885_vm10 = vmor %vm843_vm8, %vm878_vm9 }
  0xcb   : > { %v2439_v59 = vsel %vm885_vm10, 1.0, %v3046_v4 }
  0xfe   : > { %v982_v35 = vpop.f32.mrb[0].mxu1 }
  0xff   : > { %v2592_v38 = vpop.f32.mrb[1].mxu1  ;;  %v1063_v41 = vsel %vm1062_vm2, %v982_v35, %v2860_v36  ;;  %v1333_v35 = vld [vmem:[%s3670_s10 + $0x8] sm:$0xff] }
 0x100   : > { %v2768_v36 = vpack.c.bf16 %v1333_v35, %v1332_v34  ;;  %v1335_v38 = vld [vmem:[%s3670_s10 + $0x18] sm:$0xff] }
 0x102   : > { %v1054_v40 = vpop.f32.mrb[2].mxu1  ;;  %2769 = vmatpush3.bf16.msra.mxu1 %v2768_v36 }
 0x103   : > { %v1069_v42 = vsel %vm1062_vm2, %v1054_v40, %v2861_v39  ;;  %v2599_v43 = vpop.f32.mrb[3].mxu1  ;;  %2770 = vmatprep.subr.bf16.mxu1 %v3044_v2  ;;  %v2771_v39 = vpack.c.bf16 %v1335_v38, %v1334_v37  ;;  %v2451_v40 = vld [vmem:[%s3724_s8] ss:$0 sm:$0xff] }
 0x104   : > { %v2765_v44 = vpack.c.bf16 %v1069_v42, %v1063_v41  ;;  %v2452_v43 = vld [vmem:[%s3669_s9] ss:$0 sm:$0xff] }
 0x106   : > { %2766 = vmatpush3.bf16.msra.mxu0 %v2765_v44  ;;  %2772 = vmatpush3.bf16.msra.mxu1 %v2771_v39 }
 0x107   : > { %2773 = vmatprep.subr.bf16.mxu0 %v3044_v2  ;;  %2779 = vmatprep.subr.bf16.mxu1 %v3044_v2 }
 0x109   : > { %2605 = vmatmul.mubr.msk.f32.vlgmr.msra.gmra.mrb[0].mxu0 %vm912_vm1, %v2433_v47 }
 0x10a   : > { %2607 = vmatprep.mubr.msk.f32.mxu0 %vm3045_vm0, %v3046_v4 }
 0x10d   : > { %2608 = vmatmul.mubr.msk.f32.gmra.mrb[2].mxu0 %vm912_vm1, %v2434_v50 }
 0x10e   : > { %2610 = vmatprep.mubr.msk.f32.mxu0 %vm3045_vm0, %v3046_v4 }
 0x111   : > { %2611 = vmatmul.mubr.msk.f32.gmra.mrb[4].mxu0 %vm912_vm1, %v2435_v51 }
 0x112   : > { %2613 = vmatprep.mubr.msk.f32.mxu0 %vm3045_vm0, %v3046_v4 }
 0x115   : > { %2614 = vmatmul.mubr.msk.f32.gmra.mrb[6].mxu0 %vm912_vm1, %v2436_v54 }
 0x116   : > { %2616 = vmatprep.mubr.msk.f32.mxu0 %vm3045_vm0, %v3046_v4 }
 0x119   : > { %2617 = vmatmul.mubr.msk.f32.gmra.mrb[8].mxu0 %vm912_vm1, %v2437_v57 }
 0x11a   : > { %2619 = vmatprep.mubr.msk.f32.mxu0 %vm3045_vm0, %v3046_v4 }
 0x11d   : > { %2620 = vmatmul.mubr.msk.f32.gmra.mrb[10].mxu0 %vm912_vm1, %v2438_v58 }
 0x11e   : > { %2622 = vmatprep.mubr.msk.f32.mxu0 %vm3045_vm0, %v3046_v4 }
 0x121   : > { %2623 = vmatmul.mubr.msk.f32.gmra.mrb[12].mxu0 %vm912_vm1, %v2439_v59 }
 0x122   : > { %2662 = vmatprep.mubr.msk.f32.mxu0 %vm3045_vm0, %v3046_v4 }
 0x1dc   : > { %v3323_v60 = vpop.f32.mrb[0].mxu0 }
 0x1dd   : > { %v1191_v61 = vmul.f32 %v3323_v60, %v3323_v60  ;;  %v2606_v62 = vpop.f32.mrb[1].mxu0 }
 0x1df   : > { %1205 = vrot.lane.b32.xlu1 %v1191_v61, %s3697_s22 }
 0x1e0   : > { %v3328_v63 = vpop.f32.mrb[2].mxu0 }
 0x1e1   : > { %v1192_v0 = vmul.f32 %v3328_v63, %v3328_v63  ;;  %v2609_v1 = vpop.f32.mrb[3].mxu0 }
 0x1e3   : > { %1207 = vrot.lane.b32.xlu0 %v1192_v0, %s3697_s22 }
 0x1e4   : > { %v3333_v3 = vpop.f32.mrb[4].mxu0 }
 0x1e5   : > { %v1193_v5 = vmul.f32 %v3333_v3, %v3333_v3  ;;  %v2612_v6 = vpop.f32.mrb[5].mxu0 }
 0x1e7   : > { %1209 = vrot.lane.b32.xlu1 %v1193_v5, %s3697_s22 }
 0x1e8   : > { %v3338_v7 = vpop.f32.mrb[6].mxu0 }
 0x1e9   : > { %v1194_v8 = vmul.f32 %v3338_v7, %v3338_v7  ;;  %v2615_v9 = vpop.f32.mrb[7].mxu0 }
 0x1eb   : > { %1211 = vrot.lane.b32.xlu0 %v1194_v8, %s3697_s22 }
 0x1ec   : > { %v3343_v10 = vpop.f32.mrb[8].mxu0 }
 0x1ed   : > { %v1195_v11 = vmul.f32 %v3343_v10, %v3343_v10  ;;  %v2618_v12 = vpop.f32.mrb[9].mxu0 }
 0x1ef   : > { %1213 = vrot.lane.b32.xlu1 %v1195_v11, %s3697_s22 }
 0x1f0   : > { %v3348_v13 = vpop.f32.mrb[10].mxu0 }
 0x1f1   : > { %v1196_v14 = vmul.f32 %v3348_v13, %v3348_v13  ;;  %v2621_v15 = vpop.f32.mrb[11].mxu0 }
 0x1f3   : > { %1215 = vrot.lane.b32.xlu0 %v1196_v14, %s3697_s22 }
 0x1f4   : > { %v3353_v16 = vpop.f32.mrb[12].mxu0 }
 0x1f5   : > { %v1197_v17 = vmul.f32 %v3353_v16, %v3353_v16  ;;  %v2624_v18 = vpop.f32.mrb[13].mxu0 }
 0x1f7   : > { %1217 = vrot.lane.b32.xlu1 %v1197_v17, %s3697_s22 }
 0x251   : > { %v1206_v19 = vpop.permute.xlu1 %1205 }
 0x252   : > { %v1227_v20 = vsel %vm1226_vm11, %v1206_v19, 0.0 }
 0x253   : > { %1228 = vadd.xlane.f32.xlu0 %v1227_v20 }
 0x255   : > { %v1208_v21 = vpop.permute.xlu0 %1207 }
 0x256   : > { %v1230_v22 = vsel %vm1226_vm11, %v1208_v21, 0.0 }
 0x257   : > { %1231 = vadd.xlane.f32.xlu1 %v1230_v22 }
 0x259   : > { %v1210_v23 = vpop.permute.xlu1 %1209 }
 0x25a   : > { %v1233_v24 = vsel %vm1226_vm11, %v1210_v23, 0.0 }
 0x25b   : > { %1234 = vadd.xlane.f32.xlu0 %v1233_v24 }
 0x25d   : > { %v1212_v25 = vpop.permute.xlu0 %1211 }
 0x25e   : > { %v1236_v26 = vsel %vm1226_vm11, %v1212_v25, 0.0 }
 0x25f   : > { %1237 = vadd.xlane.f32.xlu0 %v1236_v26 }
 0x261   : > { %v1214_v27 = vpop.permute.xlu1 %1213 }
 0x262   : > { %v1239_v28 = vsel %vm1226_vm11, %v1214_v27, 0.0 }
 0x263   : > { %1240 = vadd.xlane.f32.xlu1 %v1239_v28 }
 0x265   : > { %v1216_v29 = vpop.permute.xlu0 %1215 }
 0x266   : > { %v1242_v30 = vsel %vm1226_vm11, %v1216_v29, 0.0 }
 0x267   : > { %1243 = vadd.xlane.f32.xlu0 %v1242_v30 }
 0x269   : > { %v1218_v31 = vpop.permute.xlu1 %1217 }
 0x26a   : > { %v1245_v33 = vsel %vm1226_vm11, %v1218_v31, 0.0 }
 0x26b   : > { %1246 = vadd.xlane.f32.xlu1 %v1245_v33 }
 0x2e0   : > { %v1229_v41 = vpop.xlane.xlu0 %1228 }
 0x2e1   : > { %v1255_v42 = vmul.f32 %v2451_v40, %v1229_v41 }
 0x2e3   : > { %v1262_v44 = vadd.f32 %v1255_v42, %v3323_v60 }
 0x2e4   : > { %v1232_v45 = vpop.xlane.xlu1 %1231 }
 0x2e5   : > { %v1276_v46 = vadd.f32 %v2452_v43, %v1262_v44  ;;  %v1256_v47 = vmul.f32 %v2451_v40, %v1232_v45 }
 0x2e7   : > { %v2453_v48 = vmul.f32 -1.442695, %v1276_v46  ;;  %v1263_v49 = vadd.f32 %v1256_v47, %v3328_v63 }
 0x2e8   : > { %v1235_v50 = vpop.xlane.xlu0 %1234 }
 0x2e9   : > { %2862 = vpow2.f32 %v2453_v48  ;;  %v1277_v51 = vadd.f32 %v2452_v43, %v1263_v49  ;;  %v1257_v52 = vmul.f32 %v2451_v40, %v1235_v50 }
 0x2eb   : > { %v2454_v53 = vmul.f32 -1.442695, %v1277_v51  ;;  %v1264_v54 = vadd.f32 %v1257_v52, %v3333_v3  ;;  %v1514_v52 = vld [vmem:[%s3672_s12 + $0x8] sm:$0xff] }
 0x2ec   : > { %v1238_v55 = vpop.xlane.xlu0 %1237 }
 0x2ed   : > { %2864 = vpow2.f32 %v2454_v53  ;;  %v1278_v56 = vadd.f32 %v2452_v43, %v1264_v54  ;;  %v1258_v57 = vmul.f32 %v2451_v40, %v1238_v55  ;;  %v1515_v54 = vld [vmem:[%s3672_s12 + $0x10] sm:$0xff]  ;;  %v1516_v55 = vld [vmem:[%s3672_s12 + $0x18] sm:$0xff] }
 0x2ef   : > { %v2455_v58 = vmul.f32 -1.442695, %v1278_v56  ;;  %v1265_v59 = vadd.f32 %v1258_v57, %v3338_v7  ;;  %v2460_v57 = vld [vmem:[%s3671_s11] ss:$0 sm:$0xff] }
 0x2f0   : > { %v1241_v61 = vpop.xlane.xlu1 %1240 }
 0x2f1   : > { %2866 = vpow2.f32 %v2455_v58  ;;  %v1279_v62 = vadd.f32 %v2452_v43, %v1265_v59  ;;  %v1259_v0 = vmul.f32 %v2451_v40, %v1241_v61 }
 0x2f3   : > { %v2863_v1 = vpop.eup %2862  ;;  %v2456_v5 = vmul.f32 -1.442695, %v1279_v62  ;;  %v1266_v6 = vadd.f32 %v1259_v0, %v3343_v10 }
 0x2f4   : > { %v1304_v8 = vadd.f32 1.0, %v2863_v1  ;;  %v1244_v9 = vpop.xlane.xlu0 %1243 }
 0x2f5   : > { %2868 = vpow2.f32 %v2456_v5  ;;  %v1280_v11 = vadd.f32 %v2452_v43, %v1266_v6  ;;  %v1260_v12 = vmul.f32 %v2451_v40, %v1244_v9 }
 0x2f6   : > { %2870 = vrcp.f32 %v1304_v8 }
 0x2f7   : > { %v2865_v14 = vpop.eup %2864  ;;  %v2457_v15 = vmul.f32 -1.442695, %v1280_v11  ;;  %v1267_v17 = vadd.f32 %v1260_v12, %v3348_v13 }
 0x2f8   : > { %v1305_v18 = vadd.f32 1.0, %v2865_v14  ;;  %v1247_v19 = vpop.xlane.xlu1 %1246 }
 0x2f9   : > { %2872 = vpow2.f32 %v2457_v15  ;;  %v1281_v20 = vadd.f32 %v2452_v43, %v1267_v17  ;;  %v1261_v21 = vmul.f32 %v2451_v40, %v1247_v19 }
 0x2fa   : > { %2874 = vrcp.f32 %v1305_v18 }
 0x2fb   : > { %v2867_v22 = vpop.eup %2866  ;;  %v2458_v23 = vmul.f32 -1.442695, %v1281_v20  ;;  %v1268_v24 = vadd.f32 %v1261_v21, %v3353_v16 }
 0x2fc   : > { %v1306_v25 = vadd.f32 1.0, %v2867_v22 }
 0x2fd   : > { %2876 = vpow2.f32 %v2458_v23  ;;  %v1282_v26 = vadd.f32 %v2452_v43, %v1268_v24 }
 0x2fe   : > { %2878 = vrcp.f32 %v1306_v25 }
 0x2ff   : > { %v2869_v27 = vpop.eup %2868  ;;  %v2459_v28 = vmul.f32 -1.442695, %v1282_v26 }
 0x300   : > { %v2871_v29 = vpop.eup %2870  ;;  %v1307_v30 = vadd.f32 1.0, %v2869_v27 }
 0x301   : > { %v1325_v31 = vmul.f32 %v2871_v29, %v1276_v46  ;;  %2880 = vpow2.f32 %v2459_v28 }
 0x302   : > { %2882 = vrcp.f32 %v1307_v30 }
 0x303   : > { %v2873_v33 = vpop.eup %2872  ;;  %2634 = vmatmul.mubr.msk.f32.vlgmr.msra.gmra.mrb[4].mxu1 %vm1062_vm2, %v1325_v31 }
 0x304   : > { %v2875_v34 = vpop.eup %2874  ;;  %v1308_v35 = vadd.f32 1.0, %v2873_v33  ;;  %2636 = vmatprep.mubr.msk.f32.mxu1 %vm3045_vm0, %v3046_v4 }
 0x305   : > { %v1326_v36 = vmul.f32 %v2875_v34, %v1277_v51  ;;  %v1513_v51 = vld [vmem:[%s3672_s12] sm:$0xff] }
 0x306   : > { %2884 = vrcp.f32 %v1308_v35  ;;  %v2774_v53 = vpack.c.bf16 %v1514_v52, %v1513_v51 }
 0x307   : > { %v2877_v37 = vpop.eup %2876  ;;  %2637 = vmatmul.mubr.msk.f32.gmra.mrb[6].mxu1 %vm1062_vm2, %v1326_v36 }
 0x308   : > { %v2879_v38 = vpop.eup %2878  ;;  %v1309_v39 = vadd.f32 1.0, %v2877_v37  ;;  %2639 = vmatprep.mubr.msk.f32.mxu1 %vm3045_vm0, %v3046_v4  ;;  %2775 = vmatpush3.bf16.msra.mxu0 %v2774_v53 }
 0x309   : > { %v1327_v40 = vmul.f32 %v2879_v38, %v1278_v56  ;;  %2776 = vmatprep.subr.bf16.mxu0 %v3044_v2  ;;  %v2777_v56 = vpack.c.bf16 %v1516_v55, %v1515_v54 }
 0x30a   : > { %2886 = vrcp.f32 %v1309_v39 }
 0x30b   : > { %v2881_v41 = vpop.eup %2880  ;;  %2640 = vmatmul.mubr.msk.f32.gmra.mrb[8].mxu1 %vm1062_vm2, %v1327_v40 }
 0x30c   : > { %v2883_v42 = vpop.eup %2882  ;;  %v1310_v43 = vadd.f32 1.0, %v2881_v41  ;;  %2642 = vmatprep.mubr.msk.f32.mxu1 %vm3045_vm0, %v3046_v4  ;;  %2778 = vmatpush3.bf16.msra.mxu0 %v2777_v56 }
 0x30d   : > { %v1328_v44 = vmul.f32 %v2883_v42, %v1279_v62  ;;  %2785 = vmatprep.subr.bf16.mxu0 %v3044_v2 }
 0x30e   : > { %2888 = vrcp.f32 %v1310_v43 }
 0x30f   : > { %2643 = vmatmul.mubr.msk.f32.gmra.mrb[10].mxu1 %vm1062_vm2, %v1328_v44 }
 0x310   : > { %v2885_v45 = vpop.eup %2884  ;;  %2645 = vmatprep.mubr.msk.f32.mxu1 %vm3045_vm0, %v3046_v4 }
 0x311   : > { %v1329_v46 = vmul.f32 %v2885_v45, %v1280_v11 }
 0x313   : > { %2646 = vmatmul.mubr.msk.f32.gmra.mrb[12].mxu1 %vm1062_vm2, %v1329_v46 }
 0x314   : > { %v2887_v47 = vpop.eup %2886  ;;  %2648 = vmatprep.mubr.msk.f32.mxu1 %vm3045_vm0, %v3046_v4 }
 0x315   : > { %v1330_v48 = vmul.f32 %v2887_v47, %v1281_v20 }
 0x317   : > { %2649 = vmatmul.mubr.msk.f32.gmra.mrb[14].mxu1 %vm1062_vm2, %v1330_v48 }
 0x318   : > { %v2889_v49 = vpop.eup %2888  ;;  %2651 = vmatprep.mubr.msk.f32.mxu1 %vm3045_vm0, %v3046_v4 }
 0x319   : > { %v1331_v50 = vmul.f32 %v2889_v49, %v1282_v26 }
 0x31b   : > { %2652 = vmatmul.mubr.msk.f32.gmra.mrb[16].mxu1 %vm1062_vm2, %v1331_v50 }
 0x31c   : > { %2691 = vmatprep.mubr.msk.f32.mxu1 %vm3045_vm0, %v3046_v4 }
 0x3d6   : > { %v1430_v58 = vpop.f32.mrb[4].mxu1 }
 0x3d7   : > { %v1431_v59 = vadd.f32 %v2460_v57, %v1430_v58  ;;  %v2635_v61 = vpop.f32.mrb[5].mxu1 }
 0x3d8   : > { %v1694_v61 = vld [vmem:[%s3674_s14] sm:$0xff] }
 0x3d9   : > { %v2468_v62 = vmul.f32 -1.442695, %v1431_v59 }
 0x3da   : > { %v1435_v0 = vpop.f32.mrb[6].mxu1 }
 0x3db   : > { %2890 = vpow2.f32 %v2468_v62  ;;  %v1436_v1 = vadd.f32 %v2460_v57, %v1435_v0  ;;  %v2638_v5 = vpop.f32.mrb[7].mxu1  ;;  %v1695_v62 = vld [vmem:[%s3674_s14 + $0x8] sm:$0xff] }
 0x3dc   : > { %v2780_v0 = vpack.c.bf16 %v1695_v62, %v1694_v61  ;;  %v1697_v5 = vld [vmem:[%s3674_s14 + $0x18] sm:$0xff] }
 0x3dd   : > { %v2469_v6 = vmul.f32 -1.442695, %v1436_v1 }
 0x3de   : > { %v1440_v8 = vpop.f32.mrb[8].mxu1  ;;  %2781 = vmatpush3.bf16.msra.mxu1 %v2780_v0 }
 0x3df   : > { %2892 = vpow2.f32 %v2469_v6  ;;  %v1441_v9 = vadd.f32 %v2460_v57, %v1440_v8  ;;  %v2641_v11 = vpop.f32.mrb[9].mxu1  ;;  %2782 = vmatprep.subr.bf16.mxu1 %v3044_v2  ;;  %v2475_v8 = vld [vmem:[%s3673_s13] ss:$0 sm:$0xff] }
 0x3e1   : > { %v2470_v12 = vmul.f32 -1.442695, %v1441_v9 }
 0x3e2   : > { %v1445_v14 = vpop.f32.mrb[10].mxu1 }
 0x3e3   : > { %2894 = vpow2.f32 %v2470_v12  ;;  %v1446_v15 = vadd.f32 %v2460_v57, %v1445_v14  ;;  %v2644_v17 = vpop.f32.mrb[11].mxu1 }
 0x3e5   : > { %v2891_v18 = vpop.eup %2890  ;;  %v2471_v19 = vmul.f32 -1.442695, %v1446_v15 }
 0x3e6   : > { %v1485_v20 = vadd.f32 1.0, %v2891_v18  ;;  %v1450_v21 = vpop.f32.mrb[12].mxu1 }
 0x3e7   : > { %2896 = vpow2.f32 %v2471_v19  ;;  %v1451_v22 = vadd.f32 %v2460_v57, %v1450_v21  ;;  %v2647_v23 = vpop.f32.mrb[13].mxu1 }
 0x3e8   : > { %2898 = vrcp.f32 %v1485_v20 }
 0x3e9   : > { %v2893_v24 = vpop.eup %2892  ;;  %v2472_v25 = vmul.f32 -1.442695, %v1451_v22 }
 0x3ea   : > { %v1486_v26 = vadd.f32 1.0, %v2893_v24  ;;  %v1455_v27 = vpop.f32.mrb[14].mxu1 }
 0x3eb   : > { %2900 = vpow2.f32 %v2472_v25  ;;  %v1456_v28 = vadd.f32 %v2460_v57, %v1455_v27  ;;  %v2650_v29 = vpop.f32.mrb[15].mxu1 }
 0x3ec   : > { %2902 = vrcp.f32 %v1486_v26 }
 0x3ed   : > { %v2895_v30 = vpop.eup %2894  ;;  %v2473_v31 = vmul.f32 -1.442695, %v1456_v28 }
 0x3ee   : > { %v1487_v33 = vadd.f32 1.0, %v2895_v30  ;;  %v1460_v34 = vpop.f32.mrb[16].mxu1 }
 0x3ef   : > { %2904 = vpow2.f32 %v2473_v31  ;;  %v1461_v35 = vadd.f32 %v2460_v57, %v1460_v34  ;;  %v2653_v36 = vpop.f32.mrb[17].mxu1 }
 0x3f0   : > { %2906 = vrcp.f32 %v1487_v33 }
 0x3f1   : > { %v2897_v37 = vpop.eup %2896  ;;  %v2474_v38 = vmul.f32 -1.442695, %v1461_v35 }
 0x3f2   : > { %v2899_v39 = vpop.eup %2898  ;;  %v1488_v40 = vadd.f32 1.0, %v2897_v37 }
 0x3f3   : > { %v3430_v41 = vmul.f32 %v2899_v39, %v1431_v59  ;;  %2908 = vpow2.f32 %v2474_v38 }
 0x3f4   : > { %2910 = vrcp.f32 %v1488_v40 }
 0x3f5   : > { %v2901_v42 = vpop.eup %2900  ;;  %2663 = vmatmul.mubr.msk.f32.vlgmr.msra.gmra.mrb[14].mxu0 %vm1062_vm2, %v3430_v41 }
 0x3f6   : > { %v2903_v43 = vpop.eup %2902  ;;  %v1489_v44 = vadd.f32 1.0, %v2901_v42  ;;  %2665 = vmatprep.mubr.msk.f32.mxu0 %vm3045_vm0, %v3046_v4 }
 0x3f7   : > { %v3436_v45 = vmul.f32 %v2903_v43, %v1436_v1  ;;  %v1696_v1 = vld [vmem:[%s3674_s14 + $0x10] sm:$0xff] }
 0x3f8   : > { %2912 = vrcp.f32 %v1489_v44  ;;  %v2783_v6 = vpack.c.bf16 %v1697_v5, %v1696_v1 }
 0x3f9   : > { %v2905_v46 = vpop.eup %2904  ;;  %2666 = vmatmul.mubr.msk.f32.gmra.mrb[16].mxu0 %vm1062_vm2, %v3436_v45 }
 0x3fa   : > { %v2907_v47 = vpop.eup %2906  ;;  %v1490_v48 = vadd.f32 1.0, %v2905_v46  ;;  %2668 = vmatprep.mubr.msk.f32.mxu0 %vm3045_vm0, %v3046_v4  ;;  %2784 = vmatpush3.bf16.msra.mxu1 %v2783_v6 }
 0x3fb   : > { %v3442_v49 = vmul.f32 %v2907_v47, %v1441_v9  ;;  %2794 = vmatprep.subr.bf16.mxu1 %v3044_v2 }
 0x3fc   : > { %2914 = vrcp.f32 %v1490_v48 }
 0x3fd   : > { %v2909_v50 = vpop.eup %2908  ;;  %2669 = vmatmul.mubr.msk.f32.gmra.mrb[18].mxu0 %vm1062_vm2, %v3442_v49 }
 0x3fe   : > { %v2911_v51 = vpop.eup %2910  ;;  %v1491_v52 = vadd.f32 1.0, %v2909_v50  ;;  %2671 = vmatprep.mubr.msk.f32.mxu0 %vm3045_vm0, %v3046_v4 }
 0x3ff   : > { %v3448_v53 = vmul.f32 %v2911_v51, %v1446_v15 }
 0x400   : > { %2916 = vrcp.f32 %v1491_v52 }
 0x401   : > { %2672 = vmatmul.mubr.msk.f32.gmra.mrb[20].mxu0 %vm1062_vm2, %v3448_v53 }
 0x402   : > { %v2913_v54 = vpop.eup %2912  ;;  %2674 = vmatprep.mubr.msk.f32.mxu0 %vm3045_vm0, %v3046_v4 }
 0x403   : > { %v3454_v55 = vmul.f32 %v2913_v54, %v1451_v22 }
 0x405   : > { %2675 = vmatmul.mubr.msk.f32.gmra.mrb[22].mxu0 %vm1062_vm2, %v3454_v55 }
 0x406   : > { %v2915_v56 = vpop.eup %2914  ;;  %2677 = vmatprep.mubr.msk.f32.mxu0 %vm3045_vm0, %v3046_v4 }
 0x407   : > { %v3460_v57 = vmul.f32 %v2915_v56, %v1456_v28 }
 0x409   : > { %2678 = vmatmul.mubr.msk.f32.gmra.mrb[24].mxu0 %vm1062_vm2, %v3460_v57 }
 0x40a   : > { %v2917_v58 = vpop.eup %2916  ;;  %2680 = vmatprep.mubr.msk.f32.mxu0 %vm3045_vm0, %v3046_v4 }
 0x40b   : > { %v3466_v59 = vmul.f32 %v2917_v58, %v1461_v35 }
 0x40d   : > { %2681 = vmatmul.mubr.msk.f32.gmra.mrb[26].mxu0 %vm1062_vm2, %v3466_v59 }
 0x40e   : > { %2726 = vmatprep.mubr.msk.f32.mxu0 %vm3045_vm0, %v3046_v4 }
 0x4c8   : > { %v1611_v9 = vpop.f32.mrb[14].mxu0 }
 0x4c9   : > { %v1612_v11 = vadd.f32 %v2475_v8, %v1611_v9  ;;  %v2664_v12 = vpop.f32.mrb[15].mxu0 }
 0x4cb   : > { %v2483_v14 = vmul.f32 -1.442695, %v1612_v11 }
 0x4cc   : > { %v1616_v15 = vpop.f32.mrb[16].mxu0 }
 0x4cd   : > { %2918 = vpow2.f32 %v2483_v14  ;;  %v1617_v17 = vadd.f32 %v2475_v8, %v1616_v15  ;;  %v2667_v18 = vpop.f32.mrb[17].mxu0 }
 0x4cf   : > { %v2484_v19 = vmul.f32 -1.442695, %v1617_v17 }
 0x4d0   : > { %v1621_v20 = vpop.f32.mrb[18].mxu0 }
 0x4d1   : > { %2920 = vpow2.f32 %v2484_v19  ;;  %v1622_v21 = vadd.f32 %v2475_v8, %v1621_v20  ;;  %v2670_v22 = vpop.f32.mrb[19].mxu0 }
 0x4d3   : > { %v2485_v23 = vmul.f32 -1.442695, %v1622_v21 }
 0x4d4   : > { %v1626_v24 = vpop.f32.mrb[20].mxu0 }
 0x4d5   : > { %2922 = vpow2.f32 %v2485_v23  ;;  %v1627_v25 = vadd.f32 %v2475_v8, %v1626_v24  ;;  %v2673_v26 = vpop.f32.mrb[21].mxu0 }
 0x4d7   : > { %v2919_v27 = vpop.eup %2918  ;;  %v2486_v28 = vmul.f32 -1.442695, %v1627_v25 }
 0x4d8   : > { %v1666_v29 = vadd.f32 1.0, %v2919_v27  ;;  %v1631_v30 = vpop.f32.mrb[22].mxu0 }
 0x4d9   : > { %2924 = vpow2.f32 %v2486_v28  ;;  %v1632_v31 = vadd.f32 %v2475_v8, %v1631_v30  ;;  %v2676_v33 = vpop.f32.mrb[23].mxu0 }
 0x4da   : > { %2926 = vrcp.f32 %v1666_v29 }
 0x4db   : > { %v2921_v34 = vpop.eup %2920  ;;  %v2487_v35 = vmul.f32 -1.442695, %v1632_v31 }
 0x4dc   : > { %v1667_v36 = vadd.f32 1.0, %v2921_v34  ;;  %v1636_v37 = vpop.f32.mrb[24].mxu0 }
 0x4dd   : > { %2928 = vpow2.f32 %v2487_v35  ;;  %v1637_v38 = vadd.f32 %v2475_v8, %v1636_v37  ;;  %v2679_v39 = vpop.f32.mrb[25].mxu0 }
 0x4de   : > { %2930 = vrcp.f32 %v1667_v36 }
 0x4df   : > { %v2923_v40 = vpop.eup %2922  ;;  %v2488_v42 = vmul.f32 -1.442695, %v1637_v38 }
 0x4e0   : > { %v1668_v43 = vadd.f32 1.0, %v2923_v40  ;;  %v1641_v44 = vpop.f32.mrb[26].mxu0 }
 0x4e1   : > { %2932 = vpow2.f32 %v2488_v42  ;;  %v1642_v46 = vadd.f32 %v2475_v8, %v1641_v44  ;;  %v2682_v47 = vpop.f32.mrb[27].mxu0 }
 0x4e2   : > { %2934 = vrcp.f32 %v1668_v43 }
 0x4e3   : > { %v2925_v48 = vpop.eup %2924  ;;  %v2489_v50 = vmul.f32 -1.442695, %v1642_v46 }
 0x4e4   : > { %v2927_v51 = vpop.eup %2926  ;;  %v1669_v52 = vadd.f32 1.0, %v2925_v48 }
 0x4e5   : > { %v1687_v54 = vmul.f32 %v2927_v51, %v1612_v11  ;;  %2936 = vpow2.f32 %v2489_v50 }
 0x4e6   : > { %2938 = vrcp.f32 %v1669_v52 }
 0x4e7   : > { %v2929_v56 = vpop.eup %2928  ;;  %2692 = vmatmul.mubr.msk.f32.vlgmr.msra.gmra.mrb[18].mxu1 %vm1062_vm2, %v1687_v54 }
 0x4e8   : > { %v2931_v58 = vpop.eup %2930  ;;  %v1670_v61 = vadd.f32 1.0, %v2929_v56  ;;  %2694 = vmatprep.mubr.msk.f32.mxu1 %vm3045_vm0, %v3046_v4 }
 0x4e9   : > { %v1688_v62 = vmul.f32 %v2931_v58, %v1617_v17 }
 0x4ea   : > { %2940 = vrcp.f32 %v1670_v61 }
 0x4eb   : > { %v2933_v0 = vpop.eup %2932  ;;  %2695 = vmatmul.mubr.msk.f32.gmra.mrb[20].mxu1 %vm1062_vm2, %v1688_v62 }
 0x4ec   : > { %v2935_v1 = vpop.eup %2934  ;;  %v1671_v5 = vadd.f32 1.0, %v2933_v0  ;;  %2697 = vmatprep.mubr.msk.f32.mxu1 %vm3045_vm0, %v3046_v4 }
 0x4ed   : > { %v1689_v6 = vmul.f32 %v2935_v1, %v1622_v21  ;;  %v2490_v21 = vld [vmem:[%s3675_s15] ss:$0 sm:$0xff] }
 0x4ee   : > { %2942 = vrcp.f32 %v1671_v5 }
 0x4ef   : > { %v2937_v8 = vpop.eup %2936  ;;  %2698 = vmatmul.mubr.msk.f32.gmra.mrb[22].mxu1 %vm1062_vm2, %v1689_v6 }
 0x4f0   : > { %v2939_v9 = vpop.eup %2938  ;;  %v1672_v11 = vadd.f32 1.0, %v2937_v8  ;;  %2700 = vmatprep.mubr.msk.f32.mxu1 %vm3045_vm0, %v3046_v4 }
 0x4f1   : > { %v1690_v12 = vmul.f32 %v2939_v9, %v1627_v25  ;;  %v2505_v9 = vld [vmem:[%s3676_s16] ss:$0 sm:$0xff] }
 0x4f2   : > { %2944 = vrcp.f32 %v1672_v11 }
 0x4f3   : > { %2701 = vmatmul.mubr.msk.f32.gmra.mrb[24].mxu1 %vm1062_vm2, %v1690_v12 }
 0x4f4   : > { %v2941_v14 = vpop.eup %2940  ;;  %2703 = vmatprep.mubr.msk.f32.mxu1 %vm3045_vm0, %v3046_v4 }
 0x4f5   : > { %v1691_v15 = vmul.f32 %v2941_v14, %v1632_v31 }
 0x4f7   : > { %2704 = vmatmul.mubr.msk.f32.gmra.mrb[26].mxu1 %vm1062_vm2, %v1691_v15 }
 0x4f8   : > { %v2943_v17 = vpop.eup %2942  ;;  %2706 = vmatprep.mubr.msk.f32.mxu1 %vm3045_vm0, %v3046_v4 }
 0x4f9   : > { %v1692_v18 = vmul.f32 %v2943_v17, %v1637_v38 }
 0x4fb   : > { %2707 = vmatmul.mubr.msk.f32.gmra.mrb[28].mxu1 %vm1062_vm2, %v1692_v18 }
 0x4fc   : > { %v2945_v19 = vpop.eup %2944  ;;  %2709 = vmatprep.mubr.msk.f32.mxu1 %vm3045_vm0, %v3046_v4 }
 0x4fd   : > { %v1693_v20 = vmul.f32 %v2945_v19, %v1642_v46 }
 0x4ff   : > { %2710 = vmatmul.mubr.msk.f32.gmra.mrb[30].mxu1 %vm1062_vm2, %v1693_v20 }
 0x500   : > { %2737 = vmatprep.mubr.msk.f32.mxu1 %vm3045_vm0, %v3046_v4 }
 0x5ba   : > { %v1792_v22 = vpop.f32.mrb[18].mxu1 }
 0x5bb   : > { %v1793_v23 = vadd.f32 %v2490_v21, %v1792_v22  ;;  %v2693_v24 = vpop.f32.mrb[19].mxu1 }
 0x5bd   : > { %v2498_v25 = vmul.f32 -1.442695, %v1793_v23 }
 0x5be   : > { %v1797_v26 = vpop.f32.mrb[20].mxu1 }
 0x5bf   : > { %2946 = vpow2.f32 %v2498_v25  ;;  %v1798_v27 = vadd.f32 %v2490_v21, %v1797_v26  ;;  %v2696_v28 = vpop.f32.mrb[21].mxu1 }
 0x5c1   : > { %v2499_v29 = vmul.f32 -1.442695, %v1798_v27 }
 0x5c2   : > { %v1802_v30 = vpop.f32.mrb[22].mxu1 }
 0x5c3   : > { %2948 = vpow2.f32 %v2499_v29  ;;  %v1803_v31 = vadd.f32 %v2490_v21, %v1802_v30  ;;  %v2699_v33 = vpop.f32.mrb[23].mxu1 }
 0x5c5   : > { %v2500_v34 = vmul.f32 -1.442695, %v1803_v31 }
 0x5c6   : > { %v1807_v35 = vpop.f32.mrb[24].mxu1 }
 0x5c7   : > { %2950 = vpow2.f32 %v2500_v34  ;;  %v1808_v36 = vadd.f32 %v2490_v21, %v1807_v35  ;;  %v2702_v37 = vpop.f32.mrb[25].mxu1 }
 0x5c9   : > { %v2947_v38 = vpop.eup %2946  ;;  %v2501_v39 = vmul.f32 -1.442695, %v1808_v36 }
 0x5ca   : > { %v1847_v40 = vadd.f32 1.0, %v2947_v38  ;;  %v1812_v42 = vpop.f32.mrb[26].mxu1 }
 0x5cb   : > { %2952 = vpow2.f32 %v2501_v39  ;;  %v1813_v43 = vadd.f32 %v2490_v21, %v1812_v42  ;;  %v2705_v44 = vpop.f32.mrb[27].mxu1 }
 0x5cc   : > { %2954 = vrcp.f32 %v1847_v40 }
 0x5cd   : > { %v2949_v46 = vpop.eup %2948  ;;  %v2502_v47 = vmul.f32 -1.442695, %v1813_v43 }
 0x5ce   : > { %v1848_v48 = vadd.f32 1.0, %v2949_v46  ;;  %v1817_v50 = vpop.f32.mrb[28].mxu1 }
 0x5cf   : > { %2956 = vpow2.f32 %v2502_v47  ;;  %v1818_v51 = vadd.f32 %v2490_v21, %v1817_v50  ;;  %v2708_v52 = vpop.f32.mrb[29].mxu1 }
 0x5d0   : > { %2958 = vrcp.f32 %v1848_v48  ;;  %v2001_v52 = vld [vmem:[%s3678_s18 + $0x8] sm:$0xff] }
 0x5d1   : > { %v2951_v54 = vpop.eup %2950  ;;  %v2503_v56 = vmul.f32 -1.442695, %v1818_v51 }
 0x5d2   : > { %v1849_v58 = vadd.f32 1.0, %v2951_v54  ;;  %v1822_v61 = vpop.f32.mrb[30].mxu1  ;;  %v2002_v54 = vld [vmem:[%s3678_s18 + $0x10] sm:$0xff] }
 0x5d3   : > { %2960 = vpow2.f32 %v2503_v56  ;;  %v1823_v62 = vadd.f32 %v2490_v21, %v1822_v61  ;;  %v2711_v0 = vpop.f32.mrb[31].mxu1 }
 0x5d4   : > { %2962 = vrcp.f32 %v1849_v58  ;;  %v2003_v58 = vld [vmem:[%s3678_s18 + $0x18] sm:$0xff] }
 0x5d5   : > { %v2953_v1 = vpop.eup %2952  ;;  %v2504_v5 = vmul.f32 -1.442695, %v1823_v62  ;;  %v2798_v61 = vpack.c.bf16 %v2003_v58, %v2002_v54 }
 0x5d6   : > { %v2955_v6 = vpop.eup %2954  ;;  %v1850_v8 = vadd.f32 1.0, %v2953_v1 }
 0x5d7   : > { %v1868_v11 = vmul.f32 %v2955_v6, %v1793_v23  ;;  %2964 = vpow2.f32 %v2504_v5 }
 0x5d8   : > { %2966 = vrcp.f32 %v1850_v8 }
 0x5d9   : > { %v2957_v12 = vpop.eup %2956  ;;  %v1882_v14 = vmul.f32 %v2505_v9, %v1868_v11 }
 0x5da   : > { %v2959_v15 = vpop.eup %2958  ;;  %v1851_v17 = vadd.f32 1.0, %v2957_v12 }
 0x5db   : > { %v1869_v18 = vmul.f32 %v2959_v15, %v1798_v27  ;;  %v1889_v19 = vsel %vm1062_vm2, %v1882_v14, 0.0 }
 0x5dc   : > { %2968 = vrcp.f32 %v1851_v17  ;;  %1890 = vadd.xlane.f32.xlu0 %v1889_v19 }
 0x5dd   : > { %v2961_v20 = vpop.eup %2960  ;;  %v1883_v21 = vmul.f32 %v2505_v9, %v1869_v18  ;;  %v901_v18 = vshrl.u32 %v807_v32, 7  ;;  %v1999_v32 = vld [vmem:[%s3677_s17 + $0x8] sm:$0xff] }
 0x5de   : > { %v2963_v22 = vpop.eup %2962  ;;  %v1852_v24 = vadd.f32 1.0, %v2961_v20 }
 0x5df   : > { %v1870_v25 = vmul.f32 %v2963_v22, %v1803_v31  ;;  %v1892_v26 = vsel %vm1062_vm2, %v1883_v21, 0.0  ;;  %v1998_v22 = vld [vmem:[%s3677_s17] sm:$0xff] }
 0x5e0   : > { %2970 = vrcp.f32 %v1852_v24  ;;  %1893 = vadd.xlane.f32.xlu1 %v1892_v26 }
 0x5e1   : > { %v2965_v23 = vpop.eup %2964  ;;  %v1884_v28 = vmul.f32 %v2505_v9, %v1870_v25 }
 0x5e2   : > { %v2967_v29 = vpop.eup %2966  ;;  %v1853_v30 = vadd.f32 1.0, %v2965_v23 }
 0x5e3   : > { %v1871_v33 = vmul.f32 %v2967_v29, %v1808_v36  ;;  %v1895_v27 = vsel %vm1062_vm2, %v1884_v28, 0.0  ;;  %v2162_v29 = vld [vmem:[%s3680_s20] sm:$0xff] }
 0x5e4   : > { %2972 = vrcp.f32 %v1853_v30  ;;  %1896 = vadd.xlane.f32.xlu0 %v1895_v27  ;;  %v2165_v27 = vld [vmem:[%s3680_s20 + $0x18] sm:$0xff] }
 0x5e5   : > { %v1885_v34 = vmul.f32 %v2505_v9, %v1871_v33  ;;  %v2164_v33 = vld [vmem:[%s3680_s20 + $0x10] sm:$0xff] }
 0x5e6   : > { %v2969_v35 = vpop.eup %2968 }
 0x5e7   : > { %v1872_v37 = vmul.f32 %v2969_v35, %v1813_v43  ;;  %v1898_v38 = vsel %vm1062_vm2, %v1885_v34, 0.0  ;;  %v2248_v43 = vld [vmem:[%s800_s21] sm:$0xff]  ;;  %v2807_v34 = vpack.c.bf16 %v2165_v27, %v2164_v33 }
 0x5e8   : > { %1899 = vadd.xlane.f32.xlu1 %v1898_v38 }
 0x5e9   : > { %v1886_v31 = vmul.f32 %v2505_v9, %v1872_v37  ;;  %v2979_v37 = vld [vmem:[%s3256_s4] sm:$0xff]  ;;  %s767_s4 = sand.u32 1, %s3034_s30  }
 0x5ea   : > { %v2971_v39 = vpop.eup %2970 }
 0x5eb   : > { %v1873_v40 = vmul.f32 %v2971_v39, %v1818_v51  ;;  %v1901_v42 = vsel %vm1062_vm2, %v1886_v31, 0.0  ;;  %v2000_v51 = vld [vmem:[%s3678_s18] sm:$0xff] }
 0x5ec   : > { %1902 = vadd.xlane.f32.xlu0 %v1901_v42  ;;  %v2795_v56 = vpack.c.bf16 %v2001_v52, %v2000_v51  ;;  %v2509_v31 = vld [vmem:[%s3679_s19] ss:$0 sm:$0xff] }
 0x5ed   : > { %v1887_v44 = vmul.f32 %v2505_v9, %v1873_v40 }
 0x5ee   : > { %v2973_v46 = vpop.eup %2972  ;;  %2796 = vmatpush3.bf16.msra.mxu1 %v2795_v56 }
 0x5ef   : > { %v1874_v36 = vmul.f32 %v2973_v46, %v1823_v62  ;;  %v1904_v47 = vsel %vm1062_vm2, %v1887_v44, 0.0  ;;  %2797 = vmatprep.subr.bf16.mxu1 %v3044_v2 }
 0x5f0   : > { %1905 = vadd.xlane.f32.xlu1 %v1904_v47 }
 0x5f1   : > { %v1888_v48 = vmul.f32 %v2505_v9, %v1874_v36 }
 0x5f2   : > { %2799 = vmatpush3.bf16.msra.mxu1 %v2798_v61 }
 0x5f3   : > { %v1907_v50 = vsel %vm1062_vm2, %v1888_v48, 0.0 }
 0x5f4   : > { %1908 = vadd.xlane.f32.xlu0 %v1907_v50 }
 0x601   : > { %2251 = vperm.xlu1 %2856, %v2248_v43  }
 0x669   : > { %v1891_v62 = vpop.xlane.xlu0 %1890 }
 0x66a   : > { %v1910_v0 = vmul.f32 %v1891_v62, %v3323_v60 }
 0x66c   : > { %v1917_v6 = vsel %vm1062_vm2, %v3430_v41, %v1910_v0 }
 0x66d   : > { %v1894_v1 = vpop.xlane.xlu1 %1893 }
 0x66e   : > { %v1911_v5 = vmul.f32 %v1894_v1, %v3328_v63 }
 0x670   : > { %v1918_v8 = vsel %vm1062_vm2, %v3436_v45, %v1911_v5 }
 0x671   : > { %v2786_v9 = vpack.c.bf16 %v1918_v8, %v1917_v6  ;;  %v1897_v11 = vpop.xlane.xlu0 %1896 }
 0x672   : > { %v1912_v12 = vmul.f32 %v1897_v11, %v3333_v3 }
 0x673   : > { %2787 = vmatpush3.bf16.msra.mxu0 %v2786_v9 }
 0x674   : > { %2788 = vmatprep.subr.bf16.mxu0 %v3044_v2  ;;  %v1919_v63 = vsel %vm1062_vm2, %v3442_v49, %v1912_v12  ;;  %v2440_v49 = vld [vmem:[%s788_s29] ss:$0 sm:$0xff]  ;;  %s3730_s29 = sld [smem:[#allocation22_spill]] }
 0x675   : > { %v1900_v14 = vpop.xlane.xlu1 %1899  ;;  %vm907_vm12 = vcmp.eq.s32.totalorder %v2440_v49, %v901_v18 }
 0x676   : > { %v1913_v60 = vmul.f32 %v1900_v14, %v3338_v7 }
 0x678   : > { %v1920_v41 = vsel %vm1062_vm2, %v3448_v53, %v1913_v60 }
 0x679   : > { %v2789_v15 = vpack.c.bf16 %v1920_v41, %v1919_v63  ;;  %v1903_v17 = vpop.xlane.xlu0 %1902 }
 0x67a   : > { %v1914_v45 = vmul.f32 %v1903_v17, %v3343_v10  ;;  %s3617_s28 = scalar_lea.hbm %s3730_s29, %s2514_s3 }
 0x67b   : > { %2790 = vmatpush3.bf16.msra.mxu0 %v2789_v15 }
 0x67c   : > { %2791 = vmatprep.subr.bf16.mxu0 %v3044_v2  ;;  %v1921_v53 = vsel %vm1062_vm2, %v3454_v55, %v1914_v45  ;;  %v2801_v55 = vpack.c.bf16 %v1999_v32, %v1998_v22 }
 0x67d   : > { %v1906_v3 = vpop.xlane.xlu1 %1905 }
 0x67e   : > { %v1915_v7 = vmul.f32 %v1906_v3, %v3348_v13  ;;  %v2441_v13 = vsel %vm907_vm12, 1.0, %v3046_v4 }
 0x680   : > { %v1922_v19 = vsel %vm1062_vm2, %v3460_v57, %v1915_v7  ;;  %v2978_v57 = vld [vmem:[%s3250_s0] sm:$0xff]  ;;  %s3729_s0 = sld [smem:[#allocation21_spill]] }
 0x681   : > { %v2792_v20 = vpack.c.bf16 %v1922_v19, %v1921_v53  ;;  %v1909_v10 = vpop.xlane.xlu0 %1908  ;;  %v2252_v24 = vpop.permute.xlu1 %2251 }
 0x682   : > { %v1916_v21 = vmul.f32 %v1909_v10, %v3353_v16 }
 0x683   : > { %2793 = vmatpush3.bf16.msra.mxu0 %v2792_v20 }
 0x684   : > { %2724 = vmatprep.subr.mxu0 %v3046_v4  ;;  %v1923_v16 = vsel %vm1062_vm2, %v3466_v59, %v1916_v21 }
 0x686   : > { %v2511_v50 = vld [vmem:[%s3729_s0] ss:$0 sm:$0xff] }
 0x687   : > { %2725 = vmatpush3.msra.mxu0 %v1923_v16 }
 0x688   : > { %2727 = vmatmul.mubr.msk.f32.vlgmr.msra.gmra.mrb[28].mxu0 %vm1924_vm13, %v2441_v13  ;;  %2800 = vmatprep.subr.bf16.mxu0 %v3044_v2 }
 0x689   : > { %2802 = vmatpush3.bf16.msra.mxu0 %v2801_v55  ;;  %2744 = vmatprep.mubr.msk.f32.mxu0 %vm3045_vm0, %v3046_v4 }
 0x68a   : > { %2803 = vmatprep.subr.bf16.mxu0 %v3044_v2 }
 0x68c   : > { %2745 = vmatmul.mubr.msk.f32.vlgmr.msra.gmra.mrb[30].mxu0 %vm912_vm1, %v2978_v57 }
 0x68d   : > { %2755 = vmatprep.mubr.msk.f32.mxu0 %vm3045_vm0, %v3046_v4  ;;  %v2163_v4 = vld [vmem:[%s3680_s20 + $0x8] sm:$0xff] }
 0x68e   : > { %v2804_v30 = vpack.c.bf16 %v2163_v4, %v2162_v29 }
 0x690   : > { %2805 = vmatpush3.bf16.msra.mxu0 %v2804_v30 }
 0x691   : > { %2806 = vmatprep.subr.bf16.mxu0 %v3044_v2 }
 0x694   : > { %2808 = vmatpush3.bf16.msra.mxu0 %v2807_v34 }
 0x75b   : > { %v1994_v25 = vpop.f32.mrb[28].mxu0 }
 0x75c   : > { %v2254_v59 = vmul.f32 %v2252_v24, %v1994_v25  ;;  %2738 = vmatmul.mubr.msk.f32.vlgmr.msra.gmra.mrb[32].mxu1 %vm1062_vm2, %v1994_v25  ;;  %v2728_v26 = vpop.f32.mrb[29].mxu0 }
 0x75e   : > { %2256 = vrot.lane.b32.xlu0 %v2254_v59, %s3727_s7  ;;  %s2426_s7 = sshll.u32 %s767_s4, 3 }
 0x75f   : > { %v2143_v23 = vpop.f32.mrb[30].mxu0  ;;  %s769_s27 = scalar_lea.vmem [#allocation2], %s2426_s7  ;;  %s2986_s7 = scalar_lea.vmem %s2985_s25, 256 }
 0x760   : > { %v2746_v28 = vpop.f32.mrb[31].mxu0  ;;  %s2279_s8 = sshll.u32 %s769_s27, 4  ;;  %s3619_s8 = int_to_ptr.vmem [resolvable:$true] %s2279_s8 }
 0x761   : > { %s2980_s21 = scalar_lea.vmem %s3619_s8, 128  ;;  %p2987_p0 = scmp.lt.s32.totalorder %s3619_s8, %s2985_s25 }
 0x762   : > { %p2981_p11 = scmp.ne.s32.totalorder %s3619_s8, %s2980_s21  ;;  %p2988_p1 = scmp.lt.s32.totalorder %s2986_s7, %s2980_s21 }
 0x764   : > { %p2982_p12 = pnand %p2981_p11, %p3209_p5  ;;  %p2989_p2 = por %p2988_p1, %p2987_p0 }
 0x766   : > { %p2983_p13 = pneg %p2982_p12 }
 0x768   : > { %p2990_p3 = pnand %p2989_p2, %p2983_p13 }
 0x7d0   : > { %v2257_v35 = vpop.permute.xlu0 %2256 }
 0x7d1   : > { %v2259_v38 = vadd.f32 %v2979_v37, %v2257_v35 }
 0x7d3   : > { %2260 = vst.msk [vmem:[%s804_s1] sm:$0xff] %vm1226_vm11, %v2259_v38  ;;  %s2262_s1 = scalar_lea.sflag [#allocation3], %s767_s4 }
 0x82f   : > { %v2073_v2 = vpop.f32.mrb[32].mxu1 }
 0x830   : > { %v2144_v39 = vadd.f32 %v2143_v23, %v2073_v2  ;;  %v2739_v40 = vpop.f32.mrb[33].mxu1 }
 0x832   : > { %v2154_v42 = vadd.f32 %v2509_v31, %v2144_v39 }
 0x834   : > { %v2510_v44 = vmul.f32 -1.442695, %v2154_v42 }
 0x836   : > { %2974 = vpow2.f32 %v2510_v44 }
 0x840   : > { %v2975_v46 = vpop.eup %2974 }
 0x841   : > { %v2158_v36 = vadd.f32 1.0, %v2975_v46 }
 0x843   : > { %2976 = vrcp.f32 %v2158_v36 }
 0x84d   : > { %v2977_v47 = vpop.eup %2976 }
 0x84e   : > { %v2161_v48 = vmul.f32 %v2977_v47, %v2154_v42 }
 0x850   : > { %2756 = vmatmul.mubr.msk.f32.vlgmr.msra.gmra.mrb[32].mxu0 %vm1062_vm2, %v2161_v48 }
 0x923   : > { %v2242_v43 = vpop.f32.mrb[32].mxu0 }
 0x924   : > { %v2243_v51 = vadd.f32 %v2511_v50, %v2242_v43  ;;  %v2757_v52 = vpop.f32.mrb[33].mxu0 }
 0x926   : > { %v2246_v54 = vadd.f32 %v2978_v57, %v2243_v51 }
 0x928   : > { %2247 = vst.msk [vmem:[%s769_s27] sm:$0xff] %vm912_vm1, %v2246_v54 }
 0x929   : > { %2993 = shalt.err (!%p2990_p3)
}
 0x92a   : > { %s2994_s4 = scalar_lea.hbm %s3617_s28, 128  ;;  %s2998_s0 = scalar_lea.hbm %s3730_s29, 512 }
 0x92b   : > { %p2995_p4 = scmp.ne.s32.totalorder %s3617_s28, %s2994_s4  ;;  %p2999_p9 = scmp.lt.u32.totalorder %s3617_s28, %s3730_s29 }
 0x92c   : > { %p3000_p10 = scmp.lt.u32.totalorder %s2998_s0, %s2994_s4  ;;  %p3002_p12 = scmp.lt.u32.totalorder %s2994_s4, %s3617_s28 }
 0x92d   : > { %p2996_p7 = pnand %p2995_p4, %p3209_p5 }
 0x92e   : > { %p3001_p11 = por %p3000_p10, %p2999_p9 }
 0x92f   : > { %p2997_p8 = pneg %p2996_p7 }
 0x930   : > { %p3003_p13 = por %p3002_p12, %p3001_p11 }
 0x932   : > { %p3004_p0 = pnand %p3003_p13, %p2997_p8 }
 0x934   : > { %3007 = shalt.err (!%p3004_p0)
}
 0x935   : > { %2810 = dma.vmem_to_hbm [thread:$0]  (%p3209_p5), %s3619_s8, 128, %s3617_s28, %s2262_s1  }
 0x936 PF: > { %s3731_s22 = sld [smem:[#allocation7_spill]]  ;;  %s3732_s26 = sld [smem:[#allocation5_spill]] }
 0x93c   : > { %p2816_p1 = scmp.ge.s32.totalorder %s3731_s22, 2  ;;  %s2294_s5 = sand.u32 1, %s3732_s26  }
 0x93d   : > { %s2295_s25 = scalar_lea.sflag [#allocation3], %s2294_s5 }
 0x93e   : > { %p2813_p2 = pnand %p2816_p1, %p3213_p6 }
 0x940   : > { %3025 = dma.done.wait (!%p2813_p2), %s2295_s25, 128  }
 0x941   : > { %3027 = vsyncadd (!%p2813_p2), %s2295_s25, 4294967168  ;;  %s3734_s25 = sld [smem:[#allocation8_spill]]  ;;  %s3735_s7 = sld [smem:[#allocation6_spill]] }
 0x942   : > { %s3736_s24 = sld [smem:[#allocation9_spill]]  ;;  %s3737_s4 = smov %s3034_s30 }
 0x947   : > { %p34_p3 = scmp.ge.s32.totalorder %s3734_s25, 6   ;;  %s3738_s30 = smov %s3735_s7 }
 0x949   :  { %36 = sbr.rel (!%p34_p3) target bundleno = 15 (0xf), region = 170 }
 0x950   :  { %2307 = vsyncpa [#allocation3], 1 }
 0x951   :  { %2309 = vsyncpa [#allocation3 + $0x1], 1 }

</bundles_post_ra>
